<compile_context>
chip_gen: v6e
topology: v6e:2x2x1
jax: 0.10.0
libtpu: 0.0.40
codegen_flags: <defaults>
</compile_context>

<pallas_src>
import jax
import jax.numpy as jnp
from jax.experimental import pallas as pl
from jax.experimental.pallas import tpu as pltpu

LN_EPS = 1e-5   # PyTorch nn.LayerNorm default
LANE = 128      # TPU lane width


# ---------------------------------------------------------------------------
# Build-time glue: dense normalized cross-layer adjacency (matches the
# torch.sparse construction in create_cross_layer_adjacency).
# ---------------------------------------------------------------------------
def create_cross_layer_adjacency_dense(orig_size: int, downsampled_size: int):
    factor = orig_size // downsampled_size
    di, dj = jnp.meshgrid(
        jnp.arange(downsampled_size), jnp.arange(downsampled_size), indexing="ij"
    )
    down_idx = (di * downsampled_size + dj).reshape(-1)
    oi = di * factor
    oj = dj * factor
    o1 = (oi * orig_size + oj).reshape(-1)
    o2 = (oi * orig_size + oj + 1).reshape(-1)
    o3 = ((oi + 1) * orig_size + oj).reshape(-1)
    o4 = ((oi + 1) * orig_size + oj + 1).reshape(-1)
    orig_idx = jnp.concatenate([o1, o2, o3, o4], axis=0)
    down_idx4 = jnp.tile(down_idx, 4)

    n_down = downsampled_size ** 2
    n_orig = orig_size ** 2
    A = jnp.zeros((n_down, n_orig), dtype=jnp.float32)
    A = A.at[down_idx4, orig_idx].add(1.0)   # coalesce() sums duplicates

    deg_orig = A.sum(axis=0)
    deg_down = A.sum(axis=1)
    d_orig_inv = jnp.where(deg_orig > 0, deg_orig ** -0.5, 0.0)
    d_down_inv = jnp.where(deg_down > 0, deg_down ** -0.5, 0.0)
    A = d_down_inv[:, None] * A * d_orig_inv[None, :]
    return A


# ---------------------------------------------------------------------------
# One-time constant packing (the PyTorch module's __init__ equivalent).
# Everything here is computed once and cached; the per-call forward only
# touches H_orig / H_down.
# ---------------------------------------------------------------------------
def build_cross_layer_constants(A, W1, W2, g1, b1, g2, b2, batch, feature_dim):
    B, F = batch, feature_dim
    BF = B * F
    BFp = ((BF + LANE - 1) // LANE) * LANE
    pad = BFp - BF

    A = A.astype(jnp.float32)
    A_T = A.T   # derived from the cached A -> always consistent

    def expand(block):
        blk = jnp.kron(jnp.eye(B, dtype=jnp.float32), block.astype(jnp.float32))
        return jnp.pad(blk, ((0, pad), (0, pad))) if pad else blk

    W1blk = expand(W1.T)                                 # y = x @ W^T per batch
    W2blk = expand(W2.T)
    Gmean = expand(jnp.full((F, F), 1.0 / F, jnp.float32))

    # [W | W·Gmean] fusion: one N=2*BFp matmul per path yields [z | mu].
    Wpack = jnp.concatenate(
        [W1blk, W1blk @ Gmean, W2blk, W2blk @ Gmean, Gmean], axis=1
    )                                                    # (BFp, 5*BFp)

    def tile_pad(v):
        t = jnp.tile(v.reshape(1, F).astype(jnp.float32), (1, B))
        return jnp.pad(t, ((0, 0), (0, pad))) if pad else t

    gb = jnp.concatenate(
        [tile_pad(g1), tile_pad(b1), tile_pad(g2), tile_pad(b2),
         jnp.zeros((4, BFp), jnp.float32)],
        axis=0,
    )                                                    # (8, BFp), rows 0..3 used

    return dict(A=A, A_T=A_T, Wpack=Wpack, gb=gb, BF=BF, BFp=BFp)


# ---------------------------------------------------------------------------
# Pallas kernel.  Folded layout: every feature tensor is (rows, BFp).
# Single grid step; both paths and both LayerNorms done in one invocation.
#
#   down path : [z | mu] = (A @ H_orig) @ [W1blk | W1blk·Gm]
#   orig path : [z | mu] = A^T @ (H_down @ [W2blk | W2blk·Gm])
#   LN var    : (c*c) @ Gm   (block-diag group-mean matmul; padded lanes stay 0)
# ---------------------------------------------------------------------------
def _cross_layer_kernel(
    a_ref,     # (N_down, N_orig)   A
    at_ref,    # (N_orig, N_down)   A^T
    ho_ref,    # (N_orig, BFp)      H_orig folded
    hd_ref,    # (N_down, BFp)      H_down folded
    w_ref,     # (BFp, 5*BFp)       [W1blk | W1blk·Gm | W2blk | W2blk·Gm | Gm]
    gb_ref,    # (8, BFp)           rows: g1, b1, g2, b2 (batch-tiled, zero-pad)
    oo_ref,    # (N_orig, BFp)      H_orig_updated
    od_ref,    # (N_down, BFp)      H_new_updated
):
    BFp = ho_ref.shape[1]
    w1f = w_ref[:, 0:2 * BFp]            # fused projection + mean (down path)
    w2f = w_ref[:, 2 * BFp:4 * BFp]      # fused projection + mean (orig path)
    gm = w_ref[:, 4 * BFp:5 * BFp]       # block-diag group-mean matrix
    gb = gb_ref[...]

    def ln_relu(zmu, gamma, beta):
        z = zmu[:, :BFp]
        mu = zmu[:, BFp:]
        c = z - mu
        var = jnp.dot(c * c, gm, preferred_element_type=jnp.float32)
        y = c * jax.lax.rsqrt(var + LN_EPS)
        return jnp.maximum(y * gamma + beta, 0.0)

    # --- downsampled-node update path (pool with A first: fewer rows) --------
    pooled = jnp.dot(a_ref[...], ho_ref[...], preferred_element_type=jnp.float32)
    zmu_d = jnp.dot(pooled, w1f, preferred_element_type=jnp.float32)
    od_ref[...] = ln_relu(zmu_d, gb[0:1, :], gb[1:2, :])

    # --- original-node update path (project with W2 first, then scatter) -----
    tmp = jnp.dot(hd_ref[...], w2f, preferred_element_type=jnp.float32)
    zmu_o = jnp.dot(at_ref[...], tmp, preferred_element_type=jnp.float32)
    oo_ref[...] = ln_relu(zmu_o, gb[2:3, :], gb[3:4, :])


# ---------------------------------------------------------------------------
# Core call in the folded (N, B*F-padded) layout (layout kept across the call).
# ---------------------------------------------------------------------------
def _cross_layer_call_folded(Ho, Hd, A, A_T, Wpack, gb):
    N_orig, BFp = Ho.shape
    N_down = Hd.shape[0]

    full = lambda shape: pl.BlockSpec(shape, lambda i: (0, 0))

    flops = int(
        2 * N_down * N_orig * BFp            # A @ Ho
        + 2 * N_down * BFp * (2 * BFp)       # pooled @ [W1 | W1·Gm]
        + 2 * N_down * BFp * BFp             # LN var (down)
        + 2 * N_down * BFp * (2 * BFp)       # Hd @ [W2 | W2·Gm]
        + 2 * N_orig * N_down * (2 * BFp)    # A^T @ tmp
        + 2 * N_orig * BFp * BFp             # LN var (orig)
    )
    bytes_accessed = int(4 * (
        A.size + A_T.size + Ho.size + Hd.size + Wpack.size + gb.size
        + (N_orig + N_down) * BFp))
    transcendentals = int((N_orig + N_down) * BFp)

    oo, od = pl.pallas_call(
        _cross_layer_kernel,
        out_shape=(
            jax.ShapeDtypeStruct((N_orig, BFp), jnp.float32),   # H_orig_updated
            jax.ShapeDtypeStruct((N_down, BFp), jnp.float32),   # H_new_updated
        ),
        grid_spec=pltpu.PrefetchScalarGridSpec(
            num_scalar_prefetch=0,
            grid=(1,),
            in_specs=[
                full((N_down, N_orig)),      # A
                full((N_orig, N_down)),      # A^T
                full((N_orig, BFp)),         # H_orig folded
                full((N_down, BFp)),         # H_down folded
                full((BFp, 5 * BFp)),        # packed weights / Gmean
                full((8, BFp)),              # packed gamma/beta
            ],
            out_specs=[
                full((N_orig, BFp)),
                full((N_down, BFp)),
            ],
        ),
        compiler_params=pltpu.CompilerParams(
            dimension_semantics=("arbitrary",),
        ),
        cost_estimate=pl.CostEstimate(
            flops=flops, transcendentals=transcendentals,
            bytes_accessed=bytes_accessed),
    )(A, A_T, Ho, Hd, Wpack, gb)
    return oo, od


# ---------------------------------------------------------------------------
# (B, N, F) wrapper matching the PyTorch module's forward signature.
# The fold/unfold here could be fused into producer/consumer in a real model.
# ---------------------------------------------------------------------------
def cross_layer_feature_update(H_orig, H_down, A, A_T, Wpack, gb):
    B, N_orig, F = H_orig.shape
    _, N_down, _ = H_down.shape
    BF = B * F
    BFp = Wpack.shape[0]
    pad = BFp - BF

    # (B, N, F) -> (N, B*F): same flattening the PyTorch module uses.
    Ho = jnp.transpose(H_orig, (1, 0, 2)).reshape(N_orig, BF).astype(jnp.float32)
    Hd = jnp.transpose(H_down, (1, 0, 2)).reshape(N_down, BF).astype(jnp.float32)
    if pad:
        Ho = jnp.pad(Ho, ((0, 0), (0, pad)))
        Hd = jnp.pad(Hd, ((0, 0), (0, pad)))

    oo_flat, od_flat = _cross_layer_call_folded(Ho, Hd, A, A_T, Wpack, gb)

    # Unfold (N, B*F) -> (B, N, F); padded lanes (all zero) are dropped.
    H_orig_updated = oo_flat[:, :BF].reshape(N_orig, B, F).transpose(1, 0, 2)
    H_new_updated = od_flat[:, :BF].reshape(N_down, B, F).transpose(1, 0, 2)
    return H_orig_updated, H_new_updated


# ---------------------------------------------------------------------------
# Pure-JAX reference (mirrors the PyTorch forward) for verification.
# ---------------------------------------------------------------------------
def reference_forward(H_orig, H_down, A, W1, W2, g1, b1, g2, b2):
    def ln(x, gamma, beta):
        mu = x.mean(-1, keepdims=True)
        var = ((x - mu) ** 2).mean(-1, keepdims=True)
        return (x - mu) / jnp.sqrt(var + LN_EPS) * gamma + beta

    h_new = jnp.einsum("do,bof->bdf", A, H_orig)
    h_new = h_new @ W1.T
    h_new = jnp.maximum(ln(h_new, g1, b1), 0.0)

    h_orig = jnp.einsum("od,bdf->bof", A.T, H_down)
    h_orig = h_orig @ W2.T
    h_orig = jnp.maximum(ln(h_orig, g2, b2), 0.0)
    return h_orig, h_new


if __name__ == "__main__":
    # Small shapes consistent with the module
    batch = 2
    feature_dim = 32
    orig_size = 16          # N_orig = 256
    downsampled_size = 8    # N_down = 64
    N_orig = orig_size ** 2
    N_down = downsampled_size ** 2

    key = jax.random.PRNGKey(0)
    k_ho, k_hd, k_w1, k_w2 = jax.random.split(key, 4)

    H_orig = jax.random.normal(k_ho, (batch, N_orig, feature_dim), dtype=jnp.float32)
    H_down = jax.random.normal(k_hd, (batch, N_down, feature_dim), dtype=jnp.float32)

    # Xavier-uniform init for the two bias-free Linear layers (fan_in = fan_out = F)
    bound = (6.0 / (feature_dim + feature_dim)) ** 0.5
    W1 = jax.random.uniform(k_w1, (feature_dim, feature_dim),
                            minval=-bound, maxval=bound, dtype=jnp.float32)
    W2 = jax.random.uniform(k_w2, (feature_dim, feature_dim),
                            minval=-bound, maxval=bound, dtype=jnp.float32)
    # LayerNorm default init: weight = 1, bias = 0
    g1 = jnp.ones((feature_dim,), jnp.float32)
    b1 = jnp.zeros((feature_dim,), jnp.float32)
    g2 = jnp.ones((feature_dim,), jnp.float32)
    b2 = jnp.zeros((feature_dim,), jnp.float32)

    A = create_cross_layer_adjacency_dense(orig_size, downsampled_size)

    # --- one-time constant packing (module __init__ equivalent) --------------
    consts = build_cross_layer_constants(A, W1, W2, g1, b1, g2, b2,
                                         batch, feature_dim)
    consts = jax.tree_util.tree_map(
        lambda x: jax.block_until_ready(x) if isinstance(x, jax.Array) else x,
        consts)

    fwd = jax.jit(cross_layer_feature_update)
    out_orig, out_down = fwd(H_orig, H_down,
                             consts["A"], consts["A_T"],
                             consts["Wpack"], consts["gb"])
    jax.block_until_ready((out_orig, out_down))

    ref_orig, ref_down = reference_forward(H_orig, H_down, A, W1, W2,
                                           g1, b1, g2, b2)
    assert out_orig.shape == (batch, N_orig, feature_dim)
    assert out_down.shape == (batch, N_down, feature_dim)
    assert jnp.allclose(out_orig, ref_orig, atol=5e-4, rtol=5e-4), (
        float(jnp.max(jnp.abs(out_orig - ref_orig))))
    assert jnp.allclose(out_down, ref_down, atol=5e-4, rtol=5e-4), (
        float(jnp.max(jnp.abs(out_down - ref_down))))

    print("KERNEL_OK")
</pallas_src>

<mosaic_0001>
module attributes {stable_mosaic.version = 11 : i64} {
  func.func @_cross_layer_kernel(%arg0: i32, %arg1: memref<64x256xf32, #tpu.memory_space<vmem>>, %arg2: memref<256x64xf32, #tpu.memory_space<vmem>>, %arg3: memref<256x128xf32, #tpu.memory_space<vmem>>, %arg4: memref<64x128xf32, #tpu.memory_space<vmem>>, %arg5: memref<128x640xf32, #tpu.memory_space<vmem>>, %arg6: memref<8x128xf32, #tpu.memory_space<vmem>>, %arg7: memref<256x128xf32, #tpu.memory_space<vmem>>, %arg8: memref<64x128xf32, #tpu.memory_space<vmem>>) attributes {dimension_semantics = [#tpu.dimension_semantics<arbitrary>], iteration_bounds = array<i64: 1>, scalar_prefetch = 0 : i64, scratch_operands = 0 : i64, tpu.core_type = #tpu.core_type<tc>, window_params = [{pipeline_mode = #tpu.pipeline_mode<synchronous>, transform_indices = @transform_0, window_bounds = array<i64: 64, 256>}, {pipeline_mode = #tpu.pipeline_mode<synchronous>, transform_indices = @transform_1, window_bounds = array<i64: 256, 64>}, {pipeline_mode = #tpu.pipeline_mode<synchronous>, transform_indices = @transform_2, window_bounds = array<i64: 256, 128>}, {pipeline_mode = #tpu.pipeline_mode<synchronous>, transform_indices = @transform_3, window_bounds = array<i64: 64, 128>}, {pipeline_mode = #tpu.pipeline_mode<synchronous>, transform_indices = @transform_4, window_bounds = array<i64: 128, 640>}, {pipeline_mode = #tpu.pipeline_mode<synchronous>, transform_indices = @transform_5, window_bounds = array<i64: 8, 128>}, {pipeline_mode = #tpu.pipeline_mode<synchronous>, transform_indices = @transform_6, window_bounds = array<i64: 256, 128>}, {pipeline_mode = #tpu.pipeline_mode<synchronous>, transform_indices = @transform_7, window_bounds = array<i64: 64, 128>}]} {
    %c0 = arith.constant 0 : index
    %c0_0 = arith.constant 0 : index
    %0 = vector.load %arg5[%c0, %c0_0] : memref<128x640xf32, #tpu.memory_space<vmem>>, vector<128x256xf32>
    %c0_1 = arith.constant 0 : index
    %c256 = arith.constant 256 : index
    %1 = vector.load %arg5[%c0_1, %c256] : memref<128x640xf32, #tpu.memory_space<vmem>>, vector<128x256xf32>
    %c0_2 = arith.constant 0 : index
    %c512 = arith.constant 512 : index
    %2 = vector.load %arg5[%c0_2, %c512] : memref<128x640xf32, #tpu.memory_space<vmem>>, vector<128x128xf32>
    %c0_3 = arith.constant 0 : index
    %c0_4 = arith.constant 0 : index
    %3 = vector.load %arg6[%c0_3, %c0_4] : memref<8x128xf32, #tpu.memory_space<vmem>>, vector<8x128xf32>
    %c0_5 = arith.constant 0 : index
    %c0_6 = arith.constant 0 : index
    %4 = vector.load %arg1[%c0_5, %c0_6] : memref<64x256xf32, #tpu.memory_space<vmem>>, vector<64x256xf32>
    %c0_7 = arith.constant 0 : index
    %c0_8 = arith.constant 0 : index
    %5 = vector.load %arg3[%c0_7, %c0_8] : memref<256x128xf32, #tpu.memory_space<vmem>>, vector<256x128xf32>
    %cst = arith.constant dense<0.000000e+00> : vector<64x128xf32>
    %6 = tpu.matmul %4, %5, %cst {dimension_numbers = #tpu.dot_dimension_numbers<[1], [0], [0], [1], [0, 0, 1, 1], [], []>} : vector<64x256xf32>, vector<256x128xf32>, vector<64x128xf32> -> vector<64x128xf32>
    %cst_9 = arith.constant dense<0.000000e+00> : vector<64x256xf32>
    %7 = tpu.matmul %6, %0, %cst_9 {dimension_numbers = #tpu.dot_dimension_numbers<[1], [0], [0], [1], [0, 0, 1, 1], [], []>} : vector<64x128xf32>, vector<128x256xf32>, vector<64x256xf32> -> vector<64x256xf32>
    %8 = vector.extract_strided_slice %3 {offsets = [0, 0], sizes = [1, 128], strides = [1, 1]} : vector<8x128xf32> to vector<1x128xf32>
    %9 = vector.extract_strided_slice %3 {offsets = [1, 0], sizes = [1, 128], strides = [1, 1]} : vector<8x128xf32> to vector<1x128xf32>
    %10 = vector.extract_strided_slice %7 {offsets = [0, 0], sizes = [64, 128], strides = [1, 1]} : vector<64x256xf32> to vector<64x128xf32>
    %11 = vector.extract_strided_slice %7 {offsets = [0, 128], sizes = [64, 128], strides = [1, 1]} : vector<64x256xf32> to vector<64x128xf32>
    %12 = arith.subf %10, %11 : vector<64x128xf32>
    %13 = arith.mulf %12, %12 : vector<64x128xf32>
    %cst_10 = arith.constant dense<0.000000e+00> : vector<64x128xf32>
    %14 = tpu.matmul %13, %2, %cst_10 {dimension_numbers = #tpu.dot_dimension_numbers<[1], [0], [0], [1], [0, 0, 1, 1], [], []>} : vector<64x128xf32>, vector<128x128xf32>, vector<64x128xf32> -> vector<64x128xf32>
    %cst_11 = arith.constant 9.99999974E-6 : f32
    %15 = vector.broadcast %cst_11 : f32 to vector<64x128xf32>
    %16 = arith.addf %14, %15 : vector<64x128xf32>
    %17 = math.rsqrt %16 : vector<64x128xf32>
    %18 = arith.mulf %12, %17 : vector<64x128xf32>
    %19 = vector.broadcast %8 : vector<1x128xf32> to vector<64x128xf32>
    %20 = arith.mulf %18, %19 : vector<64x128xf32>
    %21 = vector.broadcast %9 : vector<1x128xf32> to vector<64x128xf32>
    %22 = arith.addf %20, %21 : vector<64x128xf32>
    %cst_12 = arith.constant 0.000000e+00 : f32
    %23 = vector.broadcast %cst_12 : f32 to vector<64x128xf32>
    %24 = arith.maximumf %22, %23 : vector<64x128xf32>
    %c0_13 = arith.constant 0 : index
    %c0_14 = arith.constant 0 : index
    %25 = vector.load %arg8[%c0_13, %c0_14] : memref<64x128xf32, #tpu.memory_space<vmem>>, vector<64x128xf32>
    tpu.vector_store %arg8[%c0_13, %c0_14], %24 {strides = array<i32>} : memref<64x128xf32, #tpu.memory_space<vmem>>, vector<64x128xf32>,
    %c0_15 = arith.constant 0 : index
    %c0_16 = arith.constant 0 : index
    %26 = vector.load %arg4[%c0_15, %c0_16] : memref<64x128xf32, #tpu.memory_space<vmem>>, vector<64x128xf32>
    %cst_17 = arith.constant dense<0.000000e+00> : vector<64x256xf32>
    %27 = tpu.matmul %26, %1, %cst_17 {dimension_numbers = #tpu.dot_dimension_numbers<[1], [0], [0], [1], [0, 0, 1, 1], [], []>} : vector<64x128xf32>, vector<128x256xf32>, vector<64x256xf32> -> vector<64x256xf32>
    %c0_18 = arith.constant 0 : index
    %c0_19 = arith.constant 0 : index
    %28 = vector.load %arg2[%c0_18, %c0_19] : memref<256x64xf32, #tpu.memory_space<vmem>>, vector<256x64xf32>
    %cst_20 = arith.constant dense<0.000000e+00> : vector<256x256xf32>
    %29 = tpu.matmul %28, %27, %cst_20 {dimension_numbers = #tpu.dot_dimension_numbers<[1], [0], [0], [1], [0, 0, 1, 1], [], []>} : vector<256x64xf32>, vector<64x256xf32>, vector<256x256xf32> -> vector<256x256xf32>
    %30 = vector.extract_strided_slice %3 {offsets = [2, 0], sizes = [1, 128], strides = [1, 1]} : vector<8x128xf32> to vector<1x128xf32>
    %31 = vector.extract_strided_slice %3 {offsets = [3, 0], sizes = [1, 128], strides = [1, 1]} : vector<8x128xf32> to vector<1x128xf32>
    %32 = vector.extract_strided_slice %29 {offsets = [0, 0], sizes = [256, 128], strides = [1, 1]} : vector<256x256xf32> to vector<256x128xf32>
    %33 = vector.extract_strided_slice %29 {offsets = [0, 128], sizes = [256, 128], strides = [1, 1]} : vector<256x256xf32> to vector<256x128xf32>
    %34 = arith.subf %32, %33 : vector<256x128xf32>
    %35 = arith.mulf %34, %34 : vector<256x128xf32>
    %cst_21 = arith.constant dense<0.000000e+00> : vector<256x128xf32>
    %36 = tpu.matmul %35, %2, %cst_21 {dimension_numbers = #tpu.dot_dimension_numbers<[1], [0], [0], [1], [0, 0, 1, 1], [], []>} : vector<256x128xf32>, vector<128x128xf32>, vector<256x128xf32> -> vector<256x128xf32>
    %cst_22 = arith.constant 9.99999974E-6 : f32
    %37 = vector.broadcast %cst_22 : f32 to vector<256x128xf32>
    %38 = arith.addf %36, %37 : vector<256x128xf32>
    %39 = math.rsqrt %38 : vector<256x128xf32>
    %40 = arith.mulf %34, %39 : vector<256x128xf32>
    %41 = vector.broadcast %30 : vector<1x128xf32> to vector<256x128xf32>
    %42 = arith.mulf %40, %41 : vector<256x128xf32>
    %43 = vector.broadcast %31 : vector<1x128xf32> to vector<256x128xf32>
    %44 = arith.addf %42, %43 : vector<256x128xf32>
    %cst_23 = arith.constant 0.000000e+00 : f32
    %45 = vector.broadcast %cst_23 : f32 to vector<256x128xf32>
    %46 = arith.maximumf %44, %45 : vector<256x128xf32>
    %c0_24 = arith.constant 0 : index
    %c0_25 = arith.constant 0 : index
    %47 = vector.load %arg7[%c0_24, %c0_25] : memref<256x128xf32, #tpu.memory_space<vmem>>, vector<256x128xf32>
    tpu.vector_store %arg7[%c0_24, %c0_25], %46 {strides = array<i32>} : memref<256x128xf32, #tpu.memory_space<vmem>>, vector<256x128xf32>,
    return
  }
  func.func @transform_0(%arg0: i32) -> (i32, i32) {
    %c0_i32 = arith.constant 0 : i32
    %c0_i32_0 = arith.constant 0 : i32
    %c0_i32_1 = arith.constant 0 : i32
    return %c0_i32, %c0_i32_0 : i32, i32
  }
  func.func @transform_1(%arg0: i32) -> (i32, i32) {
    %c0_i32 = arith.constant 0 : i32
    %c0_i32_0 = arith.constant 0 : i32
    %c0_i32_1 = arith.constant 0 : i32
    return %c0_i32, %c0_i32_0 : i32, i32
  }
  func.func @transform_2(%arg0: i32) -> (i32, i32) {
    %c0_i32 = arith.constant 0 : i32
    %c0_i32_0 = arith.constant 0 : i32
    %c0_i32_1 = arith.constant 0 : i32
    return %c0_i32, %c0_i32_0 : i32, i32
  }
  func.func @transform_3(%arg0: i32) -> (i32, i32) {
    %c0_i32 = arith.constant 0 : i32
    %c0_i32_0 = arith.constant 0 : i32
    %c0_i32_1 = arith.constant 0 : i32
    return %c0_i32, %c0_i32_0 : i32, i32
  }
  func.func @transform_4(%arg0: i32) -> (i32, i32) {
    %c0_i32 = arith.constant 0 : i32
    %c0_i32_0 = arith.constant 0 : i32
    %c0_i32_1 = arith.constant 0 : i32
    return %c0_i32, %c0_i32_0 : i32, i32
  }
  func.func @transform_5(%arg0: i32) -> (i32, i32) {
    %c0_i32 = arith.constant 0 : i32
    %c0_i32_0 = arith.constant 0 : i32
    %c0_i32_1 = arith.constant 0 : i32
    return %c0_i32, %c0_i32_0 : i32, i32
  }
  func.func @transform_6(%arg0: i32) -> (i32, i32) {
    %c0_i32 = arith.constant 0 : i32
    %c0_i32_0 = arith.constant 0 : i32
    %c0_i32_1 = arith.constant 0 : i32
    return %c0_i32, %c0_i32_0 : i32, i32
  }
  func.func @transform_7(%arg0: i32) -> (i32, i32) {
    %c0_i32 = arith.constant 0 : i32
    %c0_i32_0 = arith.constant 0 : i32
    %c0_i32_1 = arith.constant 0 : i32
    return %c0_i32, %c0_i32_0 : i32, i32
  }
}

</mosaic_0001>

<bundles_post_ra>
// kernel: cross_layer_feature_update.1
= control target key start
LH: loop header
LB: loop body
LE: loop exit
PB: predicated region body
PF: predicated region fallthrough
CT: control target
= control target key end

     0   :  { %vm702_vm0 = vcmask 523264   ;;  %s3106_s2 = inlined_call_operand.vmem [shape: f32[256,128], index: 2, kind: input, shape index: {}]   ;;  %s3107_s0 = inlined_call_operand.vmem [shape: f32[64,256], index: 0, kind: input, shape index: {}]   ;;  %s3108_s4 = inlined_call_operand.vmem [shape: f32[128,640], index: 4, kind: input, shape index: {}]   ;;  %s3109_s3 = inlined_call_operand.vmem [shape: f32[64,128], index: 3, kind: input, shape index: {}]   ;;  %s3110_s1 = inlined_call_operand.vmem [shape: f32[256,64], index: 1, kind: input, shape index: {}]   ;;  %s3111_s5 = inlined_call_operand.vmem [shape: f32[8,128], index: 5, kind: input, shape index: {}]   ;;  %s3112_s7 = inlined_call_operand.vmem [shape: f32[64,128], index: 7, kind: output, shape index: {1}]   ;;  %s3113_s6 = inlined_call_operand.vmem [shape: f32[256,128], index: 6, kind: output, shape index: {0}]  }
   0x1   :  { %v153_v0 = vld [vmem:[%s3106_s2 + $0xf8] sm:$0xff]  ;;  %v152_v2 = vld [vmem:[%s3106_s2 + $0xf0] sm:$0xff]  ;;  %v151_v4 = vld [vmem:[%s3106_s2 + $0xe8] sm:$0xff] }
   0x2   :  { %v137_v1 = vld [vmem:[%s3106_s2 + $0x78] sm:$0xff]  ;;  %1585 = vmatprep.subr.mxu1 %v153_v0  ;;  %v136_v3 = vld [vmem:[%s3106_s2 + $0x70] sm:$0xff]  ;;  %v135_v5 = vld [vmem:[%s3106_s2 + $0x68] sm:$0xff] }
   0x3   :  { %1586 = vmatpush3.msra.mxu1 %v137_v1  ;;  %v150_v6 = vld [vmem:[%s3106_s2 + $0xe0] sm:$0xff]  ;;  %v149_v8 = vld [vmem:[%s3106_s2 + $0xd8] sm:$0xff]  ;;  %v148_v10 = vld [vmem:[%s3106_s2 + $0xd0] sm:$0xff] }
   0x4   :  { %1587 = vmatprep.subr.mxu1 %v152_v2  ;;  %v134_v7 = vld [vmem:[%s3106_s2 + $0x60] sm:$0xff]  ;;  %v133_v9 = vld [vmem:[%s3106_s2 + $0x58] sm:$0xff]  ;;  %v132_v11 = vld [vmem:[%s3106_s2 + $0x50] sm:$0xff] }
   0x5   :  { %1588 = vmatpush3.msra.mxu1 %v136_v3  ;;  %v147_v12 = vld [vmem:[%s3106_s2 + $0xc8] sm:$0xff]  ;;  %v146_v15 = vld [vmem:[%s3106_s2 + $0xc0] sm:$0xff]  ;;  %v145_v17 = vld [vmem:[%s3106_s2 + $0xb8] sm:$0xff] }
   0x6   :  { %1589 = vmatprep.subr.mxu1 %v151_v4  ;;  %v107_v13 = vld [vmem:[%s3107_s0 + $0x8] sm:$0xff]  ;;  %v130_v16 = vld [vmem:[%s3106_s2 + $0x40] sm:$0xff]  ;;  %v129_v18 = vld [vmem:[%s3106_s2 + $0x38] sm:$0xff] }
   0x7   :  { %1590 = vmatpush3.msra.mxu1 %v135_v5  ;;  %v131_v14 = vld [vmem:[%s3106_s2 + $0x48] sm:$0xff]  ;;  %218 = vmatprep.mubr.f32.mxu1 %v107_v13  ;;  %v144_v19 = vld [vmem:[%s3106_s2 + $0xb0] sm:$0xff]  ;;  %v142_v23 = vld [vmem:[%s3106_s2 + $0xa0] sm:$0xff] }
   0x8   :  { %1591 = vmatprep.subr.mxu1 %v150_v6  ;;  %v128_v20 = vld [vmem:[%s3106_s2 + $0x30] sm:$0xff]  ;;  %v143_v21 = vld [vmem:[%s3106_s2 + $0xa8] sm:$0xff]  ;;  %v126_v24 = vld [vmem:[%s3106_s2 + $0x20] sm:$0xff] }
   0x9   :  { %1592 = vmatpush3.msra.mxu1 %v134_v7  ;;  %v127_v22 = vld [vmem:[%s3106_s2 + $0x28] sm:$0xff]  ;;  %v141_v25 = vld [vmem:[%s3106_s2 + $0x98] sm:$0xff]  ;;  %v140_v27 = vld [vmem:[%s3106_s2 + $0x90] sm:$0xff] }
   0xa   :  { %1593 = vmatprep.subr.mxu1 %v149_v8  ;;  %v125_v26 = vld [vmem:[%s3106_s2 + $0x18] sm:$0xff]  ;;  %v124_v28 = vld [vmem:[%s3106_s2 + $0x10] sm:$0xff]  ;;  %v139_v29 = vld [vmem:[%s3106_s2 + $0x88] sm:$0xff] }
   0xb   :  { %1594 = vmatpush3.msra.mxu1 %v133_v9  ;;  %v123_v30 = vld [vmem:[%s3106_s2 + $0x8] sm:$0xff]  ;;  %v138_v31 = vld [vmem:[%s3106_s2 + $0x80] sm:$0xff]  ;;  %v109_v35 = vld [vmem:[%s3107_s0 + $0x18] sm:$0xff] }
   0xc   :  { %1595 = vmatprep.subr.mxu1 %v148_v10  ;;  %v122_v32 = vld [vmem:[%s3106_s2] sm:$0xff]  ;;  %v55_v36 = vld [vmem:[%s3108_s4 + $0x258] sm:$0xff]  ;;  %v53_v38 = vld [vmem:[%s3108_s4 + $0x230] sm:$0xff] }
   0xd   :  { %1596 = vmatpush3.msra.mxu1 %v132_v11  ;;  %v106_v33 = vld [vmem:[%s3107_s0] sm:$0xff]  ;;  %v54_v37 = vld [vmem:[%s3108_s4 + $0x238] sm:$0xff]  ;;  %v108_v39 = vld [vmem:[%s3107_s0 + $0x10] sm:$0xff] }
   0xe   :  { %1597 = vmatprep.subr.mxu1 %v147_v12  ;;  %v56_v34 = vld [vmem:[%s3108_s4 + $0x260] sm:$0xff]  ;;  %v52_v40 = vld [vmem:[%s3108_s4 + $0x210] sm:$0xff]  ;;  %v111_v41 = vld [vmem:[%s3107_s0 + $0x28] sm:$0xff] }
   0xf   :  { %1598 = vmatpush3.msra.mxu1 %v131_v14  ;;  %v51_v42 = vld [vmem:[%s3108_s4 + $0x208] sm:$0xff]  ;;  %v49_v44 = vld [vmem:[%s3108_s4 + $0x1e0] sm:$0xff]  ;;  %v113_v47 = vld [vmem:[%s3107_s0 + $0x38] sm:$0xff] }
  0x10   :  { %1599 = vmatprep.subr.mxu1 %v146_v15  ;;  %v50_v43 = vld [vmem:[%s3108_s4 + $0x1e8] sm:$0xff]  ;;  %v110_v45 = vld [vmem:[%s3107_s0 + $0x20] sm:$0xff]  ;;  %v47_v48 = vld [vmem:[%s3108_s4 + $0x1b8] sm:$0xff] }
  0x11   :  { %1600 = vmatpush3.msra.mxu1 %v130_v16  ;;  %v48_v46 = vld [vmem:[%s3108_s4 + $0x1c0] sm:$0xff]  ;;  %v46_v49 = vld [vmem:[%s3108_s4 + $0x198] sm:$0xff]  ;;  %v45_v50 = vld [vmem:[%s3108_s4 + $0x190] sm:$0xff]  ;;  %v1950_v16 = vmov 0.0  }
  0x12   :  { %1601 = vmatprep.subr.mxu1 %v145_v17  ;;  %v112_v51 = vld [vmem:[%s3107_s0 + $0x30] sm:$0xff]  ;;  %v115_v53 = vld [vmem:[%s3107_s0 + $0x48] sm:$0xff]  ;;  %v41_v56 = vld [vmem:[%s3108_s4 + $0x140] sm:$0xff] }
  0x13   :  { %1602 = vmatpush3.msra.mxu1 %v129_v18  ;;  %v44_v52 = vld [vmem:[%s3108_s4 + $0x170] sm:$0xff]  ;;  %v43_v54 = vld [vmem:[%s3108_s4 + $0x168] sm:$0xff]  ;;  %v114_v57 = vld [vmem:[%s3107_s0 + $0x40] sm:$0xff] }
  0x14   :  { %1603 = vmatprep.subr.mxu1 %v144_v19  ;;  %v42_v55 = vld [vmem:[%s3108_s4 + $0x148] sm:$0xff]  ;;  %v40_v58 = vld [vmem:[%s3108_s4 + $0x120] sm:$0xff]  ;;  %v117_v59 = vld [vmem:[%s3107_s0 + $0x58] sm:$0xff] }
  0x15   :  { %1604 = vmatpush3.msra.mxu1 %v128_v20  ;;  %v39_v60 = vld [vmem:[%s3108_s4 + $0x118] sm:$0xff]  ;;  %v37_v62 = vld [vmem:[%s3108_s4 + $0xf0] sm:$0xff]  ;;  %v119_v1 = vld [vmem:[%s3107_s0 + $0x68] sm:$0xff] }
  0x16   :  { %1605 = vmatprep.subr.mxu1 %v143_v21  ;;  %v38_v61 = vld [vmem:[%s3108_s4 + $0xf8] sm:$0xff]  ;;  %v116_v63 = vld [vmem:[%s3107_s0 + $0x50] sm:$0xff]  ;;  %v35_v2 = vld [vmem:[%s3108_s4 + $0xc8] sm:$0xff] }
  0x17   :  { %1606 = vmatpush3.msra.mxu1 %v127_v22  ;;  %v36_v0 = vld [vmem:[%s3108_s4 + $0xd0] sm:$0xff]  ;;  %v34_v3 = vld [vmem:[%s3108_s4 + $0xa8] sm:$0xff]  ;;  %v33_v4 = vld [vmem:[%s3108_s4 + $0xa0] sm:$0xff] }
  0x18   :  { %1607 = vmatprep.subr.mxu1 %v142_v23  ;;  %v118_v5 = vld [vmem:[%s3107_s0 + $0x60] sm:$0xff]  ;;  %v121_v7 = vld [vmem:[%s3107_s0 + $0x78] sm:$0xff]  ;;  %v120_v10 = vld [vmem:[%s3107_s0 + $0x70] sm:$0xff] }
  0x19   :  { %1608 = vmatpush3.msra.mxu1 %v126_v24  ;;  %v32_v6 = vld [vmem:[%s3108_s4 + $0x80] sm:$0xff]  ;;  %v31_v8 = vld [vmem:[%s3108_s4 + $0x78] sm:$0xff]  ;;  %v29_v11 = vld [vmem:[%s3108_s4 + $0x50] sm:$0xff] }
  0x1a   :  { %1609 = vmatprep.subr.mxu1 %v141_v25  ;;  %v30_v9 = vld [vmem:[%s3108_s4 + $0x58] sm:$0xff]  ;;  %v28_v12 = vld [vmem:[%s3108_s4 + $0x30] sm:$0xff]  ;;  %v27_v13 = vld [vmem:[%s3108_s4 + $0x28] sm:$0xff] }
  0x1b   :  { %1610 = vmatpush3.msra.mxu1 %v125_v26  ;;  %v26_v14 = vld [vmem:[%s3108_s4 + $0x8] sm:$0xff]  ;;  %v25_v15 = vld [vmem:[%s3108_s4] sm:$0xff]  ;;  %v88_v17 = vld [vmem:[%s3108_s4 + $0x270] sm:$0xff] }
  0x1c   :  { %1611 = vmatprep.subr.mxu1 %v140_v27  ;;  %v2238_v18 = vld [vmem:[%s3108_s4 + $0x278] sm:$0xff]  ;;  %v2243_v19 = vld [vmem:[%s3108_s4 + $0x250] sm:$0xff]  ;;  %v2250_v20 = vld [vmem:[%s3108_s4 + $0x228] sm:$0xff] }
  0x1d   :  { %1612 = vmatpush3.msra.mxu1 %v124_v28  ;;  %1713 = vmatprep.subr.mxu0 %v2238_v18  ;;  %v2257_v21 = vld [vmem:[%s3108_s4 + $0x200] sm:$0xff]  ;;  %v2264_v22 = vld [vmem:[%s3108_s4 + $0x1d8] sm:$0xff]  ;;  %v2271_v23 = vld [vmem:[%s3108_s4 + $0x1b0] sm:$0xff] }
  0x1e   :  { %1613 = vmatprep.subr.mxu1 %v139_v29  ;;  %1714 = vmatpush3.msra.mxu0 %v2238_v18  ;;  %v2278_v24 = vld [vmem:[%s3108_s4 + $0x188] sm:$0xff]  ;;  %v2285_v25 = vld [vmem:[%s3108_s4 + $0x160] sm:$0xff]  ;;  %v2292_v26 = vld [vmem:[%s3108_s4 + $0x138] sm:$0xff] }
  0x1f   :  { %1614 = vmatpush3.msra.mxu1 %v123_v30  ;;  %1715 = vmatprep.subr.mxu0 %v2243_v19  ;;  %v2299_v27 = vld [vmem:[%s3108_s4 + $0x110] sm:$0xff]  ;;  %v2306_v28 = vld [vmem:[%s3108_s4 + $0xe8] sm:$0xff] }
  0x20   :  { %1615 = vmatprep.subr.mxu1 %v138_v31  ;;  %1716 = vmatpush3.msra.mxu0 %v2243_v19 }
  0x21   :  { %1616 = vmatpush3.msra.mxu1 %v122_v32  ;;  %1717 = vmatprep.subr.mxu0 %v2250_v20  ;;  %v87_v32 = vld [vmem:[%s3108_s4 + $0x268] sm:$0xff] }
  0x22   :  { %219 = vmatmul.mubr.f32.vlgmr.msra.gmra.mxu1 %v106_v33  ;;  %259 = vmatprep.subr.mxu1 %v56_v34  ;;  %v86_v34 = vld [vmem:[%s3108_s4 + $0x248] sm:$0xff] }
  0x23   :  { %223 = vmatprep.mubr.f32.mxu1 %v109_v35  ;;  %260 = vmatpush1.msra.mxu1 %v55_v36  ;;  %v85_v35 = vld [vmem:[%s3108_s4 + $0x240] sm:$0xff] }
  0x24   :  { %261 = vmatprep.subr.mxu1 %v54_v37  ;;  %1718 = vmatpush3.msra.mxu0 %v2250_v20  ;;  %v84_v37 = vld [vmem:[%s3108_s4 + $0x220] sm:$0xff] }
  0x25   :  { %262 = vmatpush1.msra.mxu1 %v53_v38  ;;  %1719 = vmatprep.subr.mxu0 %v2257_v21 }
  0x26   :  { %224 = vmatmul.mubr.f32.gmra.mxu1 %v108_v39  ;;  %263 = vmatprep.subr.mxu1 %v52_v40  ;;  %v83_v39 = vld [vmem:[%s3108_s4 + $0x218] sm:$0xff] }
  0x27   :  { %228 = vmatprep.mubr.f32.mxu1 %v111_v41  ;;  %264 = vmatpush1.msra.mxu1 %v51_v42  ;;  %v82_v41 = vld [vmem:[%s3108_s4 + $0x1f8] sm:$0xff]  ;;  %v81_v42 = vld [vmem:[%s3108_s4 + $0x1f0] sm:$0xff] }
  0x28   :  { %265 = vmatprep.subr.mxu1 %v50_v43  ;;  %1720 = vmatpush3.msra.mxu0 %v2257_v21 }
  0x29   :  { %266 = vmatpush1.msra.mxu1 %v49_v44  ;;  %1721 = vmatprep.subr.mxu0 %v2264_v22  ;;  %v80_v44 = vld [vmem:[%s3108_s4 + $0x1d0] sm:$0xff] }
  0x2a   :  { %229 = vmatmul.mubr.f32.gmra.mxu1 %v110_v45  ;;  %267 = vmatprep.subr.mxu1 %v48_v46  ;;  %v79_v46 = vld [vmem:[%s3108_s4 + $0x1c8] sm:$0xff] }
  0x2b   :  { %233 = vmatprep.mubr.f32.mxu1 %v113_v47  ;;  %268 = vmatpush1.msra.mxu1 %v47_v48  ;;  %v78_v48 = vld [vmem:[%s3108_s4 + $0x1a8] sm:$0xff] }
  0x2c   :  { %269 = vmatprep.subr.mxu1 %v46_v49  ;;  %1722 = vmatpush3.msra.mxu0 %v2264_v22  ;;  %v77_v49 = vld [vmem:[%s3108_s4 + $0x1a0] sm:$0xff] }
  0x2d   :  { %270 = vmatpush1.msra.mxu1 %v45_v50  ;;  %1723 = vmatprep.subr.mxu0 %v2271_v23 }
  0x2e   :  { %234 = vmatmul.mubr.f32.gmra.mxu1 %v112_v51  ;;  %271 = vmatprep.subr.mxu1 %v44_v52  ;;  %v76_v51 = vld [vmem:[%s3108_s4 + $0x180] sm:$0xff] }
  0x2f   :  { %238 = vmatprep.mubr.f32.mxu1 %v115_v53  ;;  %272 = vmatpush1.msra.mxu1 %v43_v54  ;;  %v75_v53 = vld [vmem:[%s3108_s4 + $0x178] sm:$0xff] }
  0x30   :  { %273 = vmatprep.subr.mxu1 %v42_v55  ;;  %1724 = vmatpush3.msra.mxu0 %v2271_v23  ;;  %v74_v55 = vld [vmem:[%s3108_s4 + $0x158] sm:$0xff] }
  0x31   :  { %274 = vmatpush1.msra.mxu1 %v41_v56  ;;  %1725 = vmatprep.subr.mxu0 %v2278_v24  ;;  %v73_v56 = vld [vmem:[%s3108_s4 + $0x150] sm:$0xff] }
  0x32   :  { %239 = vmatmul.mubr.f32.gmra.mxu1 %v114_v57  ;;  %275 = vmatprep.subr.mxu1 %v40_v58  ;;  %v72_v58 = vld [vmem:[%s3108_s4 + $0x130] sm:$0xff] }
  0x33   :  { %243 = vmatprep.mubr.f32.mxu1 %v117_v59  ;;  %276 = vmatpush1.msra.mxu1 %v39_v60  ;;  %v71_v60 = vld [vmem:[%s3108_s4 + $0x128] sm:$0xff] }
  0x34   :  { %277 = vmatprep.subr.mxu1 %v38_v61  ;;  %1726 = vmatpush3.msra.mxu0 %v2278_v24 }
  0x35   :  { %278 = vmatpush1.msra.mxu1 %v37_v62  ;;  %1727 = vmatprep.subr.mxu0 %v2285_v25  ;;  %v70_v62 = vld [vmem:[%s3108_s4 + $0x108] sm:$0xff] }
  0x36   :  { %244 = vmatmul.mubr.f32.gmra.mxu1 %v116_v63  ;;  %279 = vmatprep.subr.mxu1 %v36_v0  ;;  %v69_v63 = vld [vmem:[%s3108_s4 + $0x100] sm:$0xff] }
  0x37   :  { %248 = vmatprep.mubr.f32.mxu1 %v119_v1  ;;  %280 = vmatpush1.msra.mxu1 %v35_v2  ;;  %v68_v1 = vld [vmem:[%s3108_s4 + $0xe0] sm:$0xff] }
  0x38   :  { %281 = vmatprep.subr.mxu1 %v34_v3  ;;  %1728 = vmatpush3.msra.mxu0 %v2285_v25  ;;  %v67_v3 = vld [vmem:[%s3108_s4 + $0xd8] sm:$0xff] }
  0x39   :  { %282 = vmatpush1.msra.mxu1 %v33_v4  ;;  %1729 = vmatprep.subr.mxu0 %v2292_v26 }
  0x3a   :  { %249 = vmatmul.mubr.f32.gmra.mxu1 %v118_v5  ;;  %283 = vmatprep.subr.mxu1 %v32_v6  ;;  %v66_v5 = vld [vmem:[%s3108_s4 + $0xb8] sm:$0xff]  ;;  %v65_v6 = vld [vmem:[%s3108_s4 + $0xb0] sm:$0xff] }
  0x3b   :  { %253 = vmatprep.mubr.f32.mxu1 %v121_v7  ;;  %284 = vmatpush1.msra.mxu1 %v31_v8  ;;  %v64_v8 = vld [vmem:[%s3108_s4 + $0x90] sm:$0xff] }
  0x3c   :  { %285 = vmatprep.subr.mxu1 %v30_v9  ;;  %1730 = vmatpush3.msra.mxu0 %v2292_v26 }
  0x3d   :  { %286 = vmatpush1.msra.mxu1 %v29_v11  ;;  %1731 = vmatprep.subr.mxu0 %v2299_v27 }
  0x3e   :  { %254 = vmatmul.mubr.f32.gmra.mxu1 %v120_v10  ;;  %287 = vmatprep.subr.mxu1 %v28_v12  ;;  %v63_v10 = vld [vmem:[%s3108_s4 + $0x88] sm:$0xff] }
  0x3f   :  { %288 = vmatpush1.msra.mxu1 %v27_v13  ;;  %323 = vmatprep.mubr.f32.mxu1 %v1950_v16  ;;  %v62_v12 = vld [vmem:[%s3108_s4 + $0x68] sm:$0xff]  ;;  %v61_v13 = vld [vmem:[%s3108_s4 + $0x60] sm:$0xff] }
  0x40   :  { %289 = vmatprep.subr.mxu1 %v26_v14  ;;  %1732 = vmatpush3.msra.mxu0 %v2299_v27 }
  0x41   :  { %290 = vmatpush1.msra.mxu1 %v25_v15  ;;  %1733 = vmatprep.subr.mxu0 %v2306_v28  ;;  %v60_v15 = vld [vmem:[%s3108_s4 + $0x40] sm:$0xff] }
  0x42   :  { %557 = vmatprep.subr.mxu1 %v88_v17  ;;  %1734 = vmatpush3.msra.mxu0 %v2306_v28 }
  0xe2   :  { %v1617_v29 = vpop.f32.mrf.mxu1 }
  0xe4   :  { %v1618_v30 = vpop.f32.mrf.mxu1 }
  0xe5   :  { %v1619_v31 = vadd.f32 %v1618_v30, %v1617_v29  ;;  %v59_v29 = vld [vmem:[%s3108_s4 + $0x38] sm:$0xff] }
  0xe6   :  { %v1620_v33 = vpop.f32.mrf.mxu1  ;;  %v58_v30 = vld [vmem:[%s3108_s4 + $0x18] sm:$0xff] }
  0xe7   :  { %324 = vmatmul.mubr.f32.vlgmr.msra.gmra.mxu1 %v1619_v31  ;;  %v57_v31 = vld [vmem:[%s3108_s4 + $0x10] sm:$0xff] }
  0xe8   :  { %v1621_v36 = vpop.f32.mrf.mxu1  ;;  %558 = vmatpush1.msra.mxu1 %v87_v32  ;;  %329 = vmatprep.mubr.f32.mxu1 %v1950_v16  ;;  %v549_v32 = vld [vmem:[%s3109_s3] sm:$0xff] }
  0xe9   :  { %v1622_v38 = vadd.f32 %v1621_v36, %v1620_v33  ;;  %559 = vmatprep.subr.mxu1 %v86_v34  ;;  %v550_v33 = vld [vmem:[%s3109_s3 + $0x8] sm:$0xff]  ;;  %v551_v34 = vld [vmem:[%s3109_s3 + $0x10] sm:$0xff]  ;;  %v553_v36 = vld [vmem:[%s3109_s3 + $0x20] sm:$0xff] }
  0xea   :  { %v1623_v40 = vpop.f32.mrf.mxu1  ;;  %560 = vmatpush1.msra.mxu1 %v85_v35  ;;  %v552_v35 = vld [vmem:[%s3109_s3 + $0x18] sm:$0xff] }
  0xeb   :  { %330 = vmatmul.mubr.f32.gmra.mxu1 %v1622_v38  ;;  %561 = vmatprep.subr.mxu1 %v84_v37  ;;  %v554_v37 = vld [vmem:[%s3109_s3 + $0x28] sm:$0xff]  ;;  %v555_v38 = vld [vmem:[%s3109_s3 + $0x30] sm:$0xff] }
  0xec   :  { %v1624_v43 = vpop.f32.mrf.mxu1  ;;  %562 = vmatpush1.msra.mxu1 %v83_v39  ;;  %335 = vmatprep.mubr.f32.mxu1 %v1950_v16  ;;  %v556_v39 = vld [vmem:[%s3109_s3 + $0x38] sm:$0xff] }
  0xed   :  { %v1625_v45 = vadd.f32 %v1624_v43, %v1623_v40  ;;  %563 = vmatprep.subr.mxu1 %v82_v41  ;;  %v2469_v40 = vld [vmem:[%s3108_s4 + $0xc0] sm:$0xff]  ;;  %v2477_v41 = vld [vmem:[%s3108_s4 + $0x98] sm:$0xff]  ;;  %v2495_v43 = vld [vmem:[%s3108_s4 + $0x48] sm:$0xff] }
  0xee   :  { %v1626_v47 = vpop.f32.mrf.mxu1  ;;  %564 = vmatpush1.msra.mxu1 %v81_v42  ;;  %1735 = vmatprep.subr.mxu0 %v2469_v40  ;;  %v2486_v42 = vld [vmem:[%s3108_s4 + $0x70] sm:$0xff] }
  0xef   :  { %336 = vmatmul.mubr.f32.gmra.mxu1 %v1625_v45  ;;  %565 = vmatprep.subr.mxu1 %v80_v44  ;;  %v2504_v44 = vld [vmem:[%s3108_s4 + $0x20] sm:$0xff] }
  0xf0   :  { %v1627_v50 = vpop.f32.mrf.mxu1  ;;  %566 = vmatpush1.msra.mxu1 %v79_v46  ;;  %341 = vmatprep.mubr.f32.mxu1 %v1950_v16 }
  0xf1   :  { %v1628_v52 = vadd.f32 %v1627_v50, %v1626_v47  ;;  %567 = vmatprep.subr.mxu1 %v78_v48  ;;  %1736 = vmatpush3.msra.mxu0 %v2469_v40 }
  0xf2   :  { %v1629_v54 = vpop.f32.mrf.mxu1  ;;  %568 = vmatpush1.msra.mxu1 %v77_v49  ;;  %1737 = vmatprep.subr.mxu0 %v2477_v41 }
  0xf3   :  { %342 = vmatmul.mubr.f32.gmra.mxu1 %v1628_v52  ;;  %569 = vmatprep.subr.mxu1 %v76_v51 }
  0xf4   :  { %v1630_v57 = vpop.f32.mrf.mxu1  ;;  %570 = vmatpush1.msra.mxu1 %v75_v53  ;;  %347 = vmatprep.mubr.f32.mxu1 %v1950_v16 }
  0xf5   :  { %v1631_v59 = vadd.f32 %v1630_v57, %v1629_v54  ;;  %571 = vmatprep.subr.mxu1 %v74_v55  ;;  %1738 = vmatpush3.msra.mxu0 %v2477_v41 }
  0xf6   :  { %v1632_v61 = vpop.f32.mrf.mxu1  ;;  %572 = vmatpush1.msra.mxu1 %v73_v56  ;;  %1739 = vmatprep.subr.mxu0 %v2486_v42 }
  0xf7   :  { %348 = vmatmul.mubr.f32.gmra.mxu1 %v1631_v59  ;;  %573 = vmatprep.subr.mxu1 %v72_v58 }
  0xf8   :  { %v1633_v0 = vpop.f32.mrf.mxu1  ;;  %574 = vmatpush1.msra.mxu1 %v71_v60  ;;  %353 = vmatprep.mubr.f32.mxu1 %v1950_v16 }
  0xf9   :  { %v1634_v2 = vadd.f32 %v1633_v0, %v1632_v61  ;;  %575 = vmatprep.subr.mxu1 %v70_v62  ;;  %1740 = vmatpush3.msra.mxu0 %v2486_v42 }
  0xfa   :  { %v1635_v4 = vpop.f32.mrf.mxu1  ;;  %576 = vmatpush1.msra.mxu1 %v69_v63  ;;  %1741 = vmatprep.subr.mxu0 %v2495_v43 }
  0xfb   :  { %354 = vmatmul.mubr.f32.gmra.mxu1 %v1634_v2  ;;  %577 = vmatprep.subr.mxu1 %v68_v1 }
  0xfc   :  { %v1636_v7 = vpop.f32.mrf.mxu1  ;;  %578 = vmatpush1.msra.mxu1 %v67_v3  ;;  %359 = vmatprep.mubr.f32.mxu1 %v1950_v16 }
  0xfd   :  { %v1637_v9 = vadd.f32 %v1636_v7, %v1635_v4  ;;  %579 = vmatprep.subr.mxu1 %v66_v5  ;;  %1742 = vmatpush3.msra.mxu0 %v2495_v43 }
  0xfe   :  { %v1638_v11 = vpop.f32.mrf.mxu1  ;;  %580 = vmatpush1.msra.mxu1 %v65_v6  ;;  %1743 = vmatprep.subr.mxu0 %v2504_v44 }
  0xff   :  { %360 = vmatmul.mubr.f32.gmra.mxu1 %v1637_v9  ;;  %581 = vmatprep.subr.mxu1 %v64_v8 }
 0x100   :  { %v1639_v14 = vpop.f32.mrf.mxu1  ;;  %582 = vmatpush1.msra.mxu1 %v63_v10  ;;  %365 = vmatprep.mubr.f32.mxu1 %v1950_v16 }
 0x101   :  { %v1640_v17 = vadd.f32 %v1639_v14, %v1638_v11  ;;  %583 = vmatprep.subr.mxu1 %v62_v12  ;;  %1744 = vmatpush3.msra.mxu0 %v2504_v44 }
 0x102   :  { %584 = vmatpush1.msra.mxu1 %v61_v13 }
 0x103   :  { %366 = vmatmul.mubr.f32.gmra.mxu1 %v1640_v17  ;;  %585 = vmatprep.subr.mxu1 %v60_v15 }
 0x104   :  { %586 = vmatpush1.msra.mxu1 %v59_v29  ;;  %621 = vmatprep.mubr.f32.mxu1 %v1950_v16 }
 0x105   :  { %587 = vmatprep.subr.mxu1 %v58_v30 }
 0x106   :  { %588 = vmatpush1.msra.mxu1 %v57_v31 }
 0x107   :  { %622 = vmatmul.mubr.f32.vlgmr.msra.gmra.mxu1 %v549_v32  ;;  %1837 = vmatprep.subr.mxu1 %v2238_v18 }
 0x108   :  { %627 = vmatprep.mubr.f32.mxu1 %v1950_v16  ;;  %1853 = vmatpush3.msra.mxu1 %v2238_v18 }
 0x109   :  { %1838 = vmatprep.subr.mxu1 %v2243_v19 }
 0x10a   :  { %1854 = vmatpush3.msra.mxu1 %v2243_v19 }
 0x10b   :  { %628 = vmatmul.mubr.f32.gmra.mxu1 %v550_v33  ;;  %1839 = vmatprep.subr.mxu1 %v2250_v20 }
 0x10c   :  { %633 = vmatprep.mubr.f32.mxu1 %v1950_v16  ;;  %1855 = vmatpush3.msra.mxu1 %v2250_v20 }
 0x10d   :  { %1840 = vmatprep.subr.mxu1 %v2257_v21 }
 0x10e   :  { %1856 = vmatpush3.msra.mxu1 %v2257_v21 }
 0x10f   :  { %634 = vmatmul.mubr.f32.gmra.mxu1 %v551_v34  ;;  %1841 = vmatprep.subr.mxu1 %v2264_v22 }
 0x110   :  { %639 = vmatprep.mubr.f32.mxu1 %v1950_v16  ;;  %1857 = vmatpush3.msra.mxu1 %v2264_v22 }
 0x111   :  { %1842 = vmatprep.subr.mxu1 %v2271_v23 }
 0x112   :  { %1858 = vmatpush3.msra.mxu1 %v2271_v23 }
 0x113   :  { %640 = vmatmul.mubr.f32.gmra.mxu1 %v552_v35  ;;  %1843 = vmatprep.subr.mxu1 %v2278_v24 }
 0x114   :  { %645 = vmatprep.mubr.f32.mxu1 %v1950_v16  ;;  %1859 = vmatpush3.msra.mxu1 %v2278_v24 }
 0x115   :  { %1844 = vmatprep.subr.mxu1 %v2285_v25 }
 0x116   :  { %1860 = vmatpush3.msra.mxu1 %v2285_v25 }
 0x117   :  { %646 = vmatmul.mubr.f32.gmra.mxu1 %v553_v36  ;;  %1845 = vmatprep.subr.mxu1 %v2292_v26 }
 0x118   :  { %651 = vmatprep.mubr.f32.mxu1 %v1950_v16  ;;  %1861 = vmatpush3.msra.mxu1 %v2292_v26 }
 0x119   :  { %1846 = vmatprep.subr.mxu1 %v2299_v27 }
 0x11a   :  { %1862 = vmatpush3.msra.mxu1 %v2299_v27 }
 0x11b   :  { %652 = vmatmul.mubr.f32.gmra.mxu1 %v554_v37  ;;  %1847 = vmatprep.subr.mxu1 %v2306_v28 }
 0x11c   :  { %657 = vmatprep.mubr.f32.mxu1 %v1950_v16  ;;  %1863 = vmatpush3.msra.mxu1 %v2306_v28 }
 0x11d   :  { %1848 = vmatprep.subr.mxu1 %v2469_v40 }
 0x11e   :  { %1864 = vmatpush3.msra.mxu1 %v2469_v40 }
 0x11f   :  { %658 = vmatmul.mubr.f32.gmra.mxu1 %v555_v38  ;;  %1849 = vmatprep.subr.mxu1 %v2477_v41 }
 0x120   :  { %663 = vmatprep.mubr.f32.mxu1 %v1950_v16  ;;  %1865 = vmatpush3.msra.mxu1 %v2477_v41 }
 0x121   :  { %1850 = vmatprep.subr.mxu1 %v2486_v42 }
 0x122   :  { %1866 = vmatpush3.msra.mxu1 %v2486_v42 }
 0x123   :  { %664 = vmatmul.mubr.f32.gmra.mxu1 %v556_v39  ;;  %1851 = vmatprep.subr.mxu1 %v2495_v43 }
 0x124   :  { %1867 = vmatpush3.msra.mxu1 %v2495_v43 }
 0x125   :  { %1852 = vmatprep.subr.mxu1 %v2504_v44 }
 0x126   :  { %1868 = vmatpush3.msra.mxu1 %v2504_v44 }
 0x1a7   :  { %v325_v45 = vpop.f32.mrf.mxu1 }
 0x1a9   :  { %v327_v46 = vpop.f32.mrf.mxu1 }
 0x1aa   :  { %v2511_v47 = vsub.f32 %v325_v45, %v327_v46  ;;  %v670_v46 = vld [vmem:[%s3110_s1] sm:$0xff] }
 0x1ab   :  { %v331_v48 = vpop.f32.mrf.mxu1 }
 0x1ac   :  { %v380_v49 = vmul.f32 %v2511_v47, %v2511_v47 }
 0x1ad   :  { %v333_v50 = vpop.f32.mrf.mxu1 }
 0x1ae   :  { %v2515_v51 = vsub.f32 %v331_v48, %v333_v50  ;;  %1745 = vmatprep.mubr.f32.mxu0 %v380_v49  ;;  %v671_v48 = vld [vmem:[%s3110_s1 + $0x8] sm:$0xff]  ;;  %v672_v49 = vld [vmem:[%s3110_s1 + $0x10] sm:$0xff] }
 0x1af   :  { %v337_v52 = vpop.f32.mrf.mxu1 }
 0x1b0   :  { %v381_v53 = vmul.f32 %v2515_v51, %v2515_v51 }
 0x1b1   :  { %v339_v54 = vpop.f32.mrf.mxu1 }
 0x1b2   :  { %v2519_v55 = vsub.f32 %v337_v52, %v339_v54  ;;  %1746 = vmatmul.mubr.f32.vlgmr.msra.gmra.mxu0 %v381_v53  ;;  %v683_v52 = vld [vmem:[%s3110_s1 + $0x68] sm:$0xff]  ;;  %v684_v53 = vld [vmem:[%s3110_s1 + $0x70] sm:$0xff]  ;;  %v685_v54 = vld [vmem:[%s3110_s1 + $0x78] sm:$0xff] }
 0x1b3   :  { %v343_v56 = vpop.f32.mrf.mxu1 }
 0x1b4   :  { %v382_v57 = vmul.f32 %v2519_v55, %v2519_v55 }
 0x1b5   :  { %v345_v58 = vpop.f32.mrf.mxu1 }
 0x1b6   :  { %v2523_v59 = vsub.f32 %v343_v56, %v345_v58  ;;  %1748 = vmatprep.mubr.f32.mxu0 %v382_v57  ;;  %v686_v56 = vld [vmem:[%s3110_s1 + $0x80] sm:$0xff]  ;;  %v687_v57 = vld [vmem:[%s3110_s1 + $0x88] sm:$0xff]  ;;  %v688_v58 = vld [vmem:[%s3110_s1 + $0x90] sm:$0xff] }
 0x1b7   :  { %v349_v60 = vpop.f32.mrf.mxu1 }
 0x1b8   :  { %v383_v61 = vmul.f32 %v2523_v59, %v2523_v59 }
 0x1b9   :  { %v351_v62 = vpop.f32.mrf.mxu1 }
 0x1ba   :  { %v2527_v63 = vsub.f32 %v349_v60, %v351_v62  ;;  %1749 = vmatmul.mubr.f32.gmra.mxu0 %v383_v61  ;;  %v689_v60 = vld [vmem:[%s3110_s1 + $0x98] sm:$0xff]  ;;  %v690_v61 = vld [vmem:[%s3110_s1 + $0xa0] sm:$0xff]  ;;  %v691_v62 = vld [vmem:[%s3110_s1 + $0xa8] sm:$0xff] }
 0x1bb   :  { %v355_v0 = vpop.f32.mrf.mxu1 }
 0x1bc   :  { %v384_v1 = vmul.f32 %v2527_v63, %v2527_v63 }
 0x1bd   :  { %v357_v2 = vpop.f32.mrf.mxu1 }
 0x1be   :  { %v2531_v3 = vsub.f32 %v355_v0, %v357_v2  ;;  %1751 = vmatprep.mubr.f32.mxu0 %v384_v1  ;;  %v692_v0 = vld [vmem:[%s3110_s1 + $0xb0] sm:$0xff]  ;;  %v693_v1 = vld [vmem:[%s3110_s1 + $0xb8] sm:$0xff]  ;;  %v694_v2 = vld [vmem:[%s3110_s1 + $0xc0] sm:$0xff] }
 0x1bf   :  { %v361_v4 = vpop.f32.mrf.mxu1 }
 0x1c0   :  { %v385_v5 = vmul.f32 %v2531_v3, %v2531_v3 }
 0x1c1   :  { %v363_v6 = vpop.f32.mrf.mxu1 }
 0x1c2   :  { %v2535_v7 = vsub.f32 %v361_v4, %v363_v6  ;;  %1752 = vmatmul.mubr.f32.gmra.mxu0 %v385_v5  ;;  %v695_v4 = vld [vmem:[%s3110_s1 + $0xc8] sm:$0xff]  ;;  %v696_v5 = vld [vmem:[%s3110_s1 + $0xd0] sm:$0xff]  ;;  %v697_v6 = vld [vmem:[%s3110_s1 + $0xd8] sm:$0xff] }
 0x1c3   :  { %v367_v8 = vpop.f32.mrf.mxu1 }
 0x1c4   :  { %v386_v9 = vmul.f32 %v2535_v7, %v2535_v7 }
 0x1c5   :  { %v369_v10 = vpop.f32.mrf.mxu1 }
 0x1c6   :  { %v2539_v11 = vsub.f32 %v367_v8, %v369_v10  ;;  %1754 = vmatprep.mubr.f32.mxu0 %v386_v9  ;;  %v698_v8 = vld [vmem:[%s3110_s1 + $0xe0] sm:$0xff]  ;;  %v699_v9 = vld [vmem:[%s3110_s1 + $0xe8] sm:$0xff]  ;;  %v700_v10 = vld [vmem:[%s3110_s1 + $0xf0] sm:$0xff] }
 0x1c7   :  { %v623_v12 = vpop.f32.mrf.mxu1 }
 0x1c8   :  { %v387_v13 = vmul.f32 %v2539_v11, %v2539_v11 }
 0x1c9   :  { %v625_v14 = vpop.f32.mrf.mxu1 }
 0x1ca   :  { %1755 = vmatmul.mubr.f32.gmra.mxu0 %v387_v13 }
 0x1cb   :  { %v629_v15 = vpop.f32.mrf.mxu1  ;;  %863 = vmatprep.mubr.f32.mxu0 %v1950_v16 }
 0x1cd   :  { %v631_v17 = vpop.f32.mrf.mxu1 }
 0x1cf   :  { %v635_v29 = vpop.f32.mrf.mxu1 }
 0x1d1   :  { %v637_v30 = vpop.f32.mrf.mxu1 }
 0x1d3   :  { %v641_v31 = vpop.f32.mrf.mxu1 }
 0x1d5   :  { %v643_v32 = vpop.f32.mrf.mxu1 }
 0x1d7   :  { %v647_v33 = vpop.f32.mrf.mxu1 }
 0x1d9   :  { %v649_v34 = vpop.f32.mrf.mxu1 }
 0x1db   :  { %v653_v35 = vpop.f32.mrf.mxu1 }
 0x1dd   :  { %v655_v36 = vpop.f32.mrf.mxu1 }
 0x1df   :  { %v659_v37 = vpop.f32.mrf.mxu1 }
 0x1e1   :  { %v661_v38 = vpop.f32.mrf.mxu1 }
 0x1e3   :  { %v665_v39 = vpop.f32.mrf.mxu1 }
 0x1e5   :  { %v667_v45 = vpop.f32.mrf.mxu1 }
 0x1e6   :  { %815 = vmatprep.subr.mxu0 %v667_v45 }
 0x1e7   :  { %816 = vmatpush1.msra.mxu0 %v665_v39 }
 0x1e8   :  { %817 = vmatprep.subr.mxu0 %v661_v38 }
 0x1e9   :  { %818 = vmatpush1.msra.mxu0 %v659_v37 }
 0x1ea   :  { %819 = vmatprep.subr.mxu0 %v655_v36 }
 0x1eb   :  { %820 = vmatpush1.msra.mxu0 %v653_v35 }
 0x1ec   :  { %821 = vmatprep.subr.mxu0 %v649_v34 }
 0x1ed   :  { %822 = vmatpush1.msra.mxu0 %v647_v33 }
 0x1ee   :  { %823 = vmatprep.subr.mxu0 %v643_v32 }
 0x1ef   :  { %824 = vmatpush1.msra.mxu0 %v641_v31 }
 0x1f0   :  { %825 = vmatprep.subr.mxu0 %v637_v30 }
 0x1f1   :  { %826 = vmatpush1.msra.mxu0 %v635_v29 }
 0x1f2   :  { %827 = vmatprep.subr.mxu0 %v631_v17 }
 0x1f3   :  { %828 = vmatpush1.msra.mxu0 %v629_v15 }
 0x1f4   :  { %829 = vmatprep.subr.mxu0 %v625_v14 }
 0x1f5   :  { %830 = vmatpush1.msra.mxu0 %v623_v12  ;;  %v701_v12 = vld [vmem:[%s3110_s1 + $0xf8] sm:$0xff] }
 0x1f6   :  { %1553 = vmatmul.mubr.msk.f32.vlgmr.msra.gmra.mxu0 %vm702_vm0, %v670_v46  ;;  %1757 = vmatprep.subr.mxu0 %v2238_v18 }
 0x1f7   :  { %869 = vmatprep.mubr.f32.mxu0 %v1950_v16  ;;  %1758 = vmatpush3.msra.mxu0 %v2238_v18  ;;  %v673_v18 = vld [vmem:[%s3110_s1 + $0x18] sm:$0xff] }
 0x1f8   :  { %1759 = vmatprep.subr.mxu0 %v2243_v19 }
 0x1f9   :  { %1760 = vmatpush3.msra.mxu0 %v2243_v19  ;;  %v674_v19 = vld [vmem:[%s3110_s1 + $0x20] sm:$0xff] }
 0x1fa   :  { %1554 = vmatmul.mubr.msk.f32.gmra.mxu0 %vm702_vm0, %v671_v48  ;;  %1761 = vmatprep.subr.mxu0 %v2250_v20 }
 0x1fb   :  { %875 = vmatprep.mubr.f32.mxu0 %v1950_v16  ;;  %1762 = vmatpush3.msra.mxu0 %v2250_v20  ;;  %v509_v20 = vlaneseq }
 0x1fc   :  { %1763 = vmatprep.subr.mxu0 %v2257_v21 }
 0x1fd   :  { %1764 = vmatpush3.msra.mxu0 %v2257_v21  ;;  %v675_v21 = vld [vmem:[%s3110_s1 + $0x28] sm:$0xff] }
 0x1fe   :  { %1555 = vmatmul.mubr.msk.f32.gmra.mxu0 %vm702_vm0, %v672_v49  ;;  %1765 = vmatprep.subr.mxu0 %v2264_v22 }
 0x1ff   :  { %881 = vmatprep.mubr.f32.mxu0 %v1950_v16  ;;  %1766 = vmatpush3.msra.mxu0 %v2264_v22  ;;  %v2591_v22 = vshrl.u32 %v509_v20, 7 }
 0x200   :  { %1767 = vmatprep.subr.mxu0 %v2271_v23 }
 0x201   :  { %1768 = vmatpush3.msra.mxu0 %v2271_v23  ;;  %v676_v23 = vld [vmem:[%s3110_s1 + $0x30] sm:$0xff]  ;;  %v511_v32 = vsub.s32 0, %v2591_v22 }
 0x202   :  { %1556 = vmatmul.mubr.msk.f32.gmra.mxu0 %vm702_vm0, %v673_v18  ;;  %1769 = vmatprep.subr.mxu0 %v2278_v24 }
 0x203   :  { %887 = vmatprep.mubr.f32.mxu0 %v1950_v16  ;;  %1770 = vmatpush3.msra.mxu0 %v2278_v24  ;;  %v1411_v24 = vsub.s32 2, %v2591_v22 }
 0x204   :  { %1771 = vmatprep.subr.mxu0 %v2285_v25 }
 0x205   :  { %1772 = vmatpush3.msra.mxu0 %v2285_v25  ;;  %v1447_v25 = vsub.s32 3, %v2591_v22 }
 0x206   :  { %1557 = vmatmul.mubr.msk.f32.gmra.mxu0 %vm702_vm0, %v674_v19  ;;  %1773 = vmatprep.subr.mxu0 %v2292_v26 }
 0x207   :  { %893 = vmatprep.mubr.f32.mxu0 %v1950_v16  ;;  %1774 = vmatpush3.msra.mxu0 %v2292_v26  ;;  %v2606_v26 = vld [vmem:[%s3111_s5] sm:$0xff] }
 0x208   :  { %1775 = vmatprep.subr.mxu0 %v2299_v27  ;;  %v2613_v50 = vrot.slane %v2606_v26, %v1447_v25  ;;  %v512_v34 = vrot.slane %v2606_v26, %v511_v32 }
 0x209   :  { %1776 = vmatpush3.msra.mxu0 %v2299_v27  ;;  %v2610_v27 = vrot.slane %v2606_v26, %v1411_v24 }
 0x20a   :  { %1558 = vmatmul.mubr.msk.f32.gmra.mxu0 %vm702_vm0, %v675_v21  ;;  %1777 = vmatprep.subr.mxu0 %v2306_v28 }
 0x20b   :  { %899 = vmatprep.mubr.f32.mxu0 %v1950_v16  ;;  %1778 = vmatpush3.msra.mxu0 %v2306_v28  ;;  %v677_v28 = vld [vmem:[%s3110_s1 + $0x38] sm:$0xff] }
 0x20c   :  { %1779 = vmatprep.subr.mxu0 %v2469_v40 }
 0x20d   :  { %1780 = vmatpush3.msra.mxu0 %v2469_v40  ;;  %v678_v40 = vld [vmem:[%s3110_s1 + $0x40] sm:$0xff] }
 0x20e   :  { %1559 = vmatmul.mubr.msk.f32.gmra.mxu0 %vm702_vm0, %v676_v23  ;;  %1781 = vmatprep.subr.mxu0 %v2477_v41 }
 0x20f   :  { %905 = vmatprep.mubr.f32.mxu0 %v1950_v16  ;;  %1782 = vmatpush3.msra.mxu0 %v2477_v41  ;;  %v679_v41 = vld [vmem:[%s3110_s1 + $0x48] sm:$0xff] }
 0x210   :  { %1783 = vmatprep.subr.mxu0 %v2486_v42 }
 0x211   :  { %1784 = vmatpush3.msra.mxu0 %v2486_v42  ;;  %v680_v42 = vld [vmem:[%s3110_s1 + $0x50] sm:$0xff] }
 0x212   :  { %1560 = vmatmul.mubr.msk.f32.gmra.mxu0 %vm702_vm0, %v677_v28  ;;  %1785 = vmatprep.subr.mxu0 %v2495_v43 }
 0x213   :  { %911 = vmatprep.mubr.f32.mxu0 %v1950_v16  ;;  %1786 = vmatpush3.msra.mxu0 %v2495_v43  ;;  %v681_v43 = vld [vmem:[%s3110_s1 + $0x58] sm:$0xff] }
 0x214   :  { %1787 = vmatprep.subr.mxu0 %v2504_v44 }
 0x215   :  { %1788 = vmatpush3.msra.mxu0 %v2504_v44  ;;  %v682_v44 = vld [vmem:[%s3110_s1 + $0x60] sm:$0xff] }
 0x216   :  { %1561 = vmatmul.mubr.msk.f32.gmra.mxu0 %vm702_vm0, %v678_v40 }
 0x217   :  { %917 = vmatprep.mubr.f32.mxu0 %v1950_v16 }
 0x21a   :  { %1562 = vmatmul.mubr.msk.f32.gmra.mxu0 %vm702_vm0, %v679_v41 }
 0x21b   :  { %923 = vmatprep.mubr.f32.mxu0 %v1950_v16 }
 0x21e   :  { %1563 = vmatmul.mubr.msk.f32.gmra.mxu0 %vm702_vm0, %v680_v42 }
 0x21f   :  { %929 = vmatprep.mubr.f32.mxu0 %v1950_v16 }
 0x222   :  { %1564 = vmatmul.mubr.msk.f32.gmra.mxu0 %vm702_vm0, %v681_v43 }
 0x223   :  { %935 = vmatprep.mubr.f32.mxu0 %v1950_v16 }
 0x226   :  { %1565 = vmatmul.mubr.msk.f32.gmra.mxu0 %vm702_vm0, %v682_v44 }
 0x227   :  { %941 = vmatprep.mubr.f32.mxu0 %v1950_v16 }
 0x22a   :  { %1566 = vmatmul.mubr.msk.f32.gmra.mxu0 %vm702_vm0, %v683_v52 }
 0x22b   :  { %947 = vmatprep.mubr.f32.mxu0 %v1950_v16 }
 0x22e   :  { %1567 = vmatmul.mubr.msk.f32.gmra.mxu0 %vm702_vm0, %v684_v53 }
 0x22f   :  { %953 = vmatprep.mubr.f32.mxu0 %v1950_v16 }
 0x232   :  { %1568 = vmatmul.mubr.msk.f32.gmra.mxu0 %vm702_vm0, %v685_v54 }
 0x233   :  { %959 = vmatprep.mubr.f32.mxu0 %v1950_v16 }
 0x236   :  { %1569 = vmatmul.mubr.msk.f32.gmra.mxu0 %vm702_vm0, %v686_v56 }
 0x237   :  { %965 = vmatprep.mubr.f32.mxu0 %v1950_v16 }
 0x23a   :  { %1570 = vmatmul.mubr.msk.f32.gmra.mxu0 %vm702_vm0, %v687_v57 }
 0x23b   :  { %971 = vmatprep.mubr.f32.mxu0 %v1950_v16 }
 0x23e   :  { %1571 = vmatmul.mubr.msk.f32.gmra.mxu0 %vm702_vm0, %v688_v58 }
 0x23f   :  { %977 = vmatprep.mubr.f32.mxu0 %v1950_v16 }
 0x242   :  { %1572 = vmatmul.mubr.msk.f32.gmra.mxu0 %vm702_vm0, %v689_v60 }
 0x243   :  { %983 = vmatprep.mubr.f32.mxu0 %v1950_v16 }
 0x246   :  { %1573 = vmatmul.mubr.msk.f32.gmra.mxu0 %vm702_vm0, %v690_v61 }
 0x247   :  { %989 = vmatprep.mubr.f32.mxu0 %v1950_v16 }
 0x24a   :  { %1574 = vmatmul.mubr.msk.f32.gmra.mxu0 %vm702_vm0, %v691_v62 }
 0x24b   :  { %995 = vmatprep.mubr.f32.mxu0 %v1950_v16 }
 0x24e   :  { %1575 = vmatmul.mubr.msk.f32.gmra.mxu0 %vm702_vm0, %v692_v0 }
 0x24f   :  { %1001 = vmatprep.mubr.f32.mxu0 %v1950_v16 }
 0x252   :  { %1576 = vmatmul.mubr.msk.f32.gmra.mxu0 %vm702_vm0, %v693_v1 }
 0x253   :  { %1007 = vmatprep.mubr.f32.mxu0 %v1950_v16 }
 0x256   :  { %1577 = vmatmul.mubr.msk.f32.gmra.mxu0 %vm702_vm0, %v694_v2 }
 0x257   :  { %1013 = vmatprep.mubr.f32.mxu0 %v1950_v16 }
 0x25a   :  { %1578 = vmatmul.mubr.msk.f32.gmra.mxu0 %vm702_vm0, %v695_v4 }
 0x25b   :  { %1019 = vmatprep.mubr.f32.mxu0 %v1950_v16 }
 0x25e   :  { %1579 = vmatmul.mubr.msk.f32.gmra.mxu0 %vm702_vm0, %v696_v5 }
 0x25f   :  { %1025 = vmatprep.mubr.f32.mxu0 %v1950_v16 }
 0x262   :  { %1580 = vmatmul.mubr.msk.f32.gmra.mxu0 %vm702_vm0, %v697_v6 }
 0x263   :  { %1031 = vmatprep.mubr.f32.mxu0 %v1950_v16 }
 0x266   :  { %1581 = vmatmul.mubr.msk.f32.gmra.mxu0 %vm702_vm0, %v698_v8 }
 0x267   :  { %1037 = vmatprep.mubr.f32.mxu0 %v1950_v16 }
 0x26a   :  { %1582 = vmatmul.mubr.msk.f32.gmra.mxu0 %vm702_vm0, %v699_v9 }
 0x26b   :  { %1043 = vmatprep.mubr.f32.mxu0 %v1950_v16 }
 0x26e   :  { %1583 = vmatmul.mubr.msk.f32.gmra.mxu0 %vm702_vm0, %v700_v10 }
 0x26f   :  { %1049 = vmatprep.mubr.f32.mxu0 %v1950_v16  ;;  %v523_v16 = vsub.s32 1, %v2591_v22 }
 0x271   :  { %v524_v38 = vrot.slane %v2606_v26, %v523_v16 }
 0x272   :  { %v1747_v13 = vpop.f32.mrf.mxu0  ;;  %1584 = vmatmul.mubr.msk.f32.gmra.mxu0 %vm702_vm0, %v701_v12 }
 0x273   :  { %v460_v14 = vadd.f32 1e-05, %v1747_v13 }
 0x274   :  { %v454_v15 = vpop.f32.mrf.mxu0 }
 0x275   :  { %1870 = vrsqrt.f32 %v460_v14  ;;  %v455_v17 = vadd.f32 1e-05, %v454_v15 }
 0x277   :  { %1872 = vrsqrt.f32 %v455_v17 }
 0x27a   :  { %v1750_v29 = vpop.f32.mrf.mxu0 }
 0x27b   :  { %v470_v30 = vadd.f32 1e-05, %v1750_v29 }
 0x27c   :  { %v464_v31 = vpop.f32.mrf.mxu0 }
 0x27d   :  { %1874 = vrsqrt.f32 %v470_v30  ;;  %v465_v33 = vadd.f32 1e-05, %v464_v31 }
 0x27f   :  { %1876 = vrsqrt.f32 %v465_v33 }
 0x282   :  { %v1871_v35 = vpop.eup %1870  ;;  %v1753_v36 = vpop.f32.mrf.mxu0 }
 0x283   :  { %v502_v37 = vmul.f32 %v1871_v35, %v2515_v51  ;;  %v480_v39 = vadd.f32 1e-05, %v1753_v36 }
 0x284   :  { %v1873_v45 = vpop.eup %1872  ;;  %v474_v46 = vpop.f32.mrf.mxu0 }
 0x285   :  { %v514_v48 = vmul.f32 %v512_v34, %v502_v37  ;;  %v501_v49 = vmul.f32 %v1873_v45, %v2511_v47  ;;  %1878 = vrsqrt.f32 %v480_v39  ;;  %v475_v18 = vadd.f32 1e-05, %v474_v46 }
 0x287   :  { %v526_v19 = vadd.f32 %v524_v38, %v514_v48  ;;  %v513_v20 = vmul.f32 %v512_v34, %v501_v49  ;;  %1880 = vrsqrt.f32 %v475_v18 }
 0x289   :  { %v534_v21 = vmax.f32 %v526_v19, 0.0  ;;  %v525_v22 = vadd.f32 %v524_v38, %v513_v20 }
 0x28a   :  { %v1875_v23 = vpop.eup %1874  ;;  %v1756_v24 = vpop.f32.mrf.mxu0 }
 0x28b   :  { %542 = vst [vmem:[%s3112_s7 + $0x8] sm:$0xff] %v534_v21  ;;  %v533_v51 = vmax.f32 %v525_v22, 0.0  ;;  %v504_v25 = vmul.f32 %v1875_v23, %v2523_v59  ;;  %v490_v26 = vadd.f32 1e-05, %v1756_v24 }
 0x28c   :  { %v1877_v28 = vpop.eup %1876  ;;  %v484_v40 = vpop.f32.mrf.mxu0 }
 0x28d   :  { %541 = vst [vmem:[%s3112_s7] sm:$0xff] %v533_v51  ;;  %v516_v47 = vmul.f32 %v512_v34, %v504_v25  ;;  %v503_v41 = vmul.f32 %v1877_v28, %v2519_v55  ;;  %1882 = vrsqrt.f32 %v490_v26  ;;  %v485_v42 = vadd.f32 1e-05, %v484_v40 }
 0x28f   :  { %v528_v43 = vadd.f32 %v524_v38, %v516_v47  ;;  %v515_v44 = vmul.f32 %v512_v34, %v503_v41  ;;  %1884 = vrsqrt.f32 %v485_v42 }
 0x291   :  { %v536_v52 = vmax.f32 %v528_v43, 0.0  ;;  %v527_v53 = vadd.f32 %v524_v38, %v515_v44 }
 0x292   :  { %v1879_v54 = vpop.eup %1878 }
 0x293   :  { %544 = vst [vmem:[%s3112_s7 + $0x18] sm:$0xff] %v536_v52  ;;  %v535_v59 = vmax.f32 %v527_v53, 0.0  ;;  %v506_v56 = vmul.f32 %v1879_v54, %v2531_v3 }
 0x294   :  { %v1881_v57 = vpop.eup %1880 }
 0x295   :  { %543 = vst [vmem:[%s3112_s7 + $0x10] sm:$0xff] %v535_v59  ;;  %v518_v55 = vmul.f32 %v512_v34, %v506_v56  ;;  %v505_v58 = vmul.f32 %v1881_v57, %v2527_v63 }
 0x297   :  { %v530_v60 = vadd.f32 %v524_v38, %v518_v55  ;;  %v517_v61 = vmul.f32 %v512_v34, %v505_v58 }
 0x299   :  { %v538_v62 = vmax.f32 %v530_v60, 0.0  ;;  %v529_v0 = vadd.f32 %v524_v38, %v517_v61 }
 0x29a   :  { %v1883_v1 = vpop.eup %1882 }
 0x29b   :  { %546 = vst [vmem:[%s3112_s7 + $0x28] sm:$0xff] %v538_v62  ;;  %v537_v2 = vmax.f32 %v529_v0, 0.0  ;;  %v508_v3 = vmul.f32 %v1883_v1, %v2539_v11 }
 0x29c   :  { %v1885_v4 = vpop.eup %1884 }
 0x29d   :  { %545 = vst [vmem:[%s3112_s7 + $0x20] sm:$0xff] %v537_v2  ;;  %v520_v5 = vmul.f32 %v512_v34, %v508_v3  ;;  %v507_v63 = vmul.f32 %v1885_v4, %v2535_v7 }
 0x29f   :  { %v532_v6 = vadd.f32 %v524_v38, %v520_v5  ;;  %v519_v8 = vmul.f32 %v512_v34, %v507_v63 }
 0x2a1   :  { %v540_v9 = vmax.f32 %v532_v6, 0.0  ;;  %v531_v10 = vadd.f32 %v524_v38, %v519_v8 }
 0x2a3   :  { %548 = vst [vmem:[%s3112_s7 + $0x38] sm:$0xff] %v540_v9  ;;  %v539_v12 = vmax.f32 %v531_v10, 0.0 }
 0x2a5   :  { %547 = vst [vmem:[%s3112_s7 + $0x30] sm:$0xff] %v539_v12 }
 0x2b6   :  { %v865_v11 = vpop.f32.mrf.mxu0 }
 0x2b8   :  { %v867_v13 = vpop.f32.mrf.mxu0 }
 0x2b9   :  { %v2786_v14 = vsub.f32 %v865_v11, %v867_v13 }
 0x2ba   :  { %v871_v15 = vpop.f32.mrf.mxu0 }
 0x2bb   :  { %v1088_v7 = vmul.f32 %v2786_v14, %v2786_v14 }
 0x2bc   :  { %v873_v17 = vpop.f32.mrf.mxu0 }
 0x2bd   :  { %v2790_v29 = vsub.f32 %v871_v15, %v873_v17  ;;  %1789 = vmatprep.mubr.f32.mxu0 %v1088_v7 }
 0x2be   :  { %v877_v30 = vpop.f32.mrf.mxu0 }
 0x2bf   :  { %v1089_v31 = vmul.f32 %v2790_v29, %v2790_v29 }
 0x2c0   :  { %v879_v32 = vpop.f32.mrf.mxu0 }
 0x2c1   :  { %v2794_v33 = vsub.f32 %v877_v30, %v879_v32  ;;  %1790 = vmatmul.mubr.f32.vlgmr.msra.gmra.mxu0 %v1089_v31 }
 0x2c2   :  { %v883_v16 = vpop.f32.mrf.mxu0 }
 0x2c3   :  { %v1090_v34 = vmul.f32 %v2794_v33, %v2794_v33 }
 0x2c4   :  { %v885_v35 = vpop.f32.mrf.mxu0 }
 0x2c5   :  { %v2798_v36 = vsub.f32 %v883_v16, %v885_v35  ;;  %1792 = vmatprep.mubr.f32.mxu0 %v1090_v34 }
 0x2c6   :  { %v889_v37 = vpop.f32.mrf.mxu0 }
 0x2c7   :  { %v1091_v38 = vmul.f32 %v2798_v36, %v2798_v36 }
 0x2c8   :  { %v891_v39 = vpop.f32.mrf.mxu0 }
 0x2c9   :  { %v2802_v45 = vsub.f32 %v889_v37, %v891_v39  ;;  %1793 = vmatmul.mubr.f32.gmra.mxu0 %v1091_v38 }
 0x2ca   :  { %v895_v46 = vpop.f32.mrf.mxu0 }
 0x2cb   :  { %v1092_v48 = vmul.f32 %v2802_v45, %v2802_v45 }
 0x2cc   :  { %v897_v49 = vpop.f32.mrf.mxu0 }
 0x2cd   :  { %v2806_v18 = vsub.f32 %v895_v46, %v897_v49  ;;  %1795 = vmatprep.mubr.f32.mxu1 %v1092_v48 }
 0x2ce   :  { %v901_v19 = vpop.f32.mrf.mxu0 }
 0x2cf   :  { %v1093_v20 = vmul.f32 %v2806_v18, %v2806_v18 }
 0x2d0   :  { %v903_v21 = vpop.f32.mrf.mxu0 }
 0x2d1   :  { %v2810_v22 = vsub.f32 %v901_v19, %v903_v21  ;;  %1796 = vmatmul.mubr.f32.vlgmr.msra.gmra.mxu1 %v1093_v20 }
 0x2d2   :  { %v907_v23 = vpop.f32.mrf.mxu0 }
 0x2d3   :  { %v1094_v24 = vmul.f32 %v2810_v22, %v2810_v22 }
 0x2d4   :  { %v909_v51 = vpop.f32.mrf.mxu0 }
 0x2d5   :  { %v2814_v25 = vsub.f32 %v907_v23, %v909_v51  ;;  %1798 = vmatprep.mubr.f32.mxu1 %v1094_v24 }
 0x2d6   :  { %v913_v26 = vpop.f32.mrf.mxu0 }
 0x2d7   :  { %v1095_v28 = vmul.f32 %v2814_v25, %v2814_v25 }
 0x2d8   :  { %v915_v40 = vpop.f32.mrf.mxu0 }
 0x2d9   :  { %v2818_v47 = vsub.f32 %v913_v26, %v915_v40  ;;  %1799 = vmatmul.mubr.f32.gmra.mxu1 %v1095_v28 }
 0x2da   :  { %v919_v41 = vpop.f32.mrf.mxu0 }
 0x2db   :  { %v1096_v42 = vmul.f32 %v2818_v47, %v2818_v47 }
 0x2dc   :  { %v921_v43 = vpop.f32.mrf.mxu0 }
 0x2dd   :  { %v2822_v44 = vsub.f32 %v919_v41, %v921_v43  ;;  %1801 = vmatprep.mubr.f32.mxu1 %v1096_v42 }
 0x2de   :  { %v925_v52 = vpop.f32.mrf.mxu0 }
 0x2df   :  { %v1097_v53 = vmul.f32 %v2822_v44, %v2822_v44 }
 0x2e0   :  { %v927_v54 = vpop.f32.mrf.mxu0 }
 0x2e1   :  { %v2826_v59 = vsub.f32 %v925_v52, %v927_v54  ;;  %1802 = vmatmul.mubr.f32.gmra.mxu1 %v1097_v53 }
 0x2e2   :  { %v931_v56 = vpop.f32.mrf.mxu0 }
 0x2e3   :  { %v1098_v57 = vmul.f32 %v2826_v59, %v2826_v59 }
 0x2e4   :  { %v933_v55 = vpop.f32.mrf.mxu0 }
 0x2e5   :  { %v2830_v58 = vsub.f32 %v931_v56, %v933_v55  ;;  %1804 = vmatprep.mubr.f32.mxu1 %v1098_v57 }
 0x2e6   :  { %v937_v60 = vpop.f32.mrf.mxu0 }
 0x2e7   :  { %v1099_v61 = vmul.f32 %v2830_v58, %v2830_v58 }
 0x2e8   :  { %v939_v62 = vpop.f32.mrf.mxu0 }
 0x2e9   :  { %v2834_v0 = vsub.f32 %v937_v60, %v939_v62  ;;  %1805 = vmatmul.mubr.f32.gmra.mxu1 %v1099_v61 }
 0x2ea   :  { %v943_v1 = vpop.f32.mrf.mxu0 }
 0x2eb   :  { %v1100_v2 = vmul.f32 %v2834_v0, %v2834_v0 }
 0x2ec   :  { %v945_v3 = vpop.f32.mrf.mxu0 }
 0x2ed   :  { %v2838_v4 = vsub.f32 %v943_v1, %v945_v3  ;;  %1807 = vmatprep.mubr.f32.mxu1 %v1100_v2 }
 0x2ee   :  { %v949_v5 = vpop.f32.mrf.mxu0 }
 0x2ef   :  { %v1101_v63 = vmul.f32 %v2838_v4, %v2838_v4 }
 0x2f0   :  { %v951_v6 = vpop.f32.mrf.mxu0 }
 0x2f1   :  { %v2842_v8 = vsub.f32 %v949_v5, %v951_v6  ;;  %1808 = vmatmul.mubr.f32.gmra.mxu1 %v1101_v63 }
 0x2f2   :  { %v955_v9 = vpop.f32.mrf.mxu0 }
 0x2f3   :  { %v1102_v10 = vmul.f32 %v2842_v8, %v2842_v8 }
 0x2f4   :  { %v957_v12 = vpop.f32.mrf.mxu0 }
 0x2f5   :  { %v2846_v11 = vsub.f32 %v955_v9, %v957_v12  ;;  %1810 = vmatprep.mubr.f32.mxu1 %v1102_v10 }
 0x2f6   :  { %v961_v13 = vpop.f32.mrf.mxu0 }
 0x2f7   :  { %v1103_v15 = vmul.f32 %v2846_v11, %v2846_v11 }
 0x2f8   :  { %v963_v7 = vpop.f32.mrf.mxu0 }
 0x2f9   :  { %v2850_v17 = vsub.f32 %v961_v13, %v963_v7  ;;  %1811 = vmatmul.mubr.f32.gmra.mxu1 %v1103_v15 }
 0x2fa   :  { %v967_v30 = vpop.f32.mrf.mxu0 }
 0x2fb   :  { %v1104_v31 = vmul.f32 %v2850_v17, %v2850_v17 }
 0x2fc   :  { %v969_v32 = vpop.f32.mrf.mxu0 }
 0x2fd   :  { %v2854_v16 = vsub.f32 %v967_v30, %v969_v32  ;;  %1813 = vmatprep.mubr.f32.mxu1 %v1104_v31 }
 0x2fe   :  { %v973_v34 = vpop.f32.mrf.mxu0 }
 0x2ff   :  { %v1105_v35 = vmul.f32 %v2854_v16, %v2854_v16 }
 0x300   :  { %v975_v37 = vpop.f32.mrf.mxu0 }
 0x301   :  { %v2858_v38 = vsub.f32 %v973_v34, %v975_v37  ;;  %1814 = vmatmul.mubr.f32.gmra.mxu1 %v1105_v35 }
 0x302   :  { %v979_v39 = vpop.f32.mrf.mxu0 }
 0x303   :  { %v1106_v46 = vmul.f32 %v2858_v38, %v2858_v38 }
 0x304   :  { %v981_v48 = vpop.f32.mrf.mxu0 }
 0x305   :  { %v2862_v49 = vsub.f32 %v979_v39, %v981_v48  ;;  %1816 = vmatprep.mubr.f32.mxu1 %v1106_v46 }
 0x306   :  { %v985_v19 = vpop.f32.mrf.mxu0 }
 0x307   :  { %v1107_v20 = vmul.f32 %v2862_v49, %v2862_v49 }
 0x308   :  { %v987_v21 = vpop.f32.mrf.mxu0 }
 0x309   :  { %v2866_v23 = vsub.f32 %v985_v19, %v987_v21  ;;  %1817 = vmatmul.mubr.f32.gmra.mxu1 %v1107_v20 }
 0x30a   :  { %v991_v24 = vpop.f32.mrf.mxu0 }
 0x30b   :  { %v1108_v51 = vmul.f32 %v2866_v23, %v2866_v23 }
 0x30c   :  { %v993_v26 = vpop.f32.mrf.mxu0 }
 0x30d   :  { %v2870_v28 = vsub.f32 %v991_v24, %v993_v26  ;;  %1819 = vmatprep.mubr.f32.mxu1 %v1108_v51 }
 0x30e   :  { %v997_v40 = vpop.f32.mrf.mxu0 }
 0x30f   :  { %v1109_v41 = vmul.f32 %v2870_v28, %v2870_v28 }
 0x310   :  { %v999_v42 = vpop.f32.mrf.mxu0 }
 0x311   :  { %v2874_v43 = vsub.f32 %v997_v40, %v999_v42  ;;  %1820 = vmatmul.mubr.f32.gmra.mxu1 %v1109_v41 }
 0x312   :  { %v1003_v52 = vpop.f32.mrf.mxu0 }
 0x313   :  { %v1110_v53 = vmul.f32 %v2874_v43, %v2874_v43 }
 0x314   :  { %v1005_v54 = vpop.f32.mrf.mxu0 }
 0x315   :  { %v2878_v56 = vsub.f32 %v1003_v52, %v1005_v54  ;;  %1822 = vmatprep.mubr.f32.mxu1 %v1110_v53 }
 0x316   :  { %v1009_v57 = vpop.f32.mrf.mxu0 }
 0x317   :  { %v1111_v55 = vmul.f32 %v2878_v56, %v2878_v56 }
 0x318   :  { %v1011_v60 = vpop.f32.mrf.mxu0 }
 0x319   :  { %v2882_v61 = vsub.f32 %v1009_v57, %v1011_v60  ;;  %1823 = vmatmul.mubr.f32.gmra.mxu1 %v1111_v55 }
 0x31a   :  { %v1015_v62 = vpop.f32.mrf.mxu0 }
 0x31b   :  { %v1112_v1 = vmul.f32 %v2882_v61, %v2882_v61 }
 0x31c   :  { %v1017_v2 = vpop.f32.mrf.mxu0 }
 0x31d   :  { %v2886_v3 = vsub.f32 %v1015_v62, %v1017_v2  ;;  %1825 = vmatprep.mubr.f32.mxu1 %v1112_v1 }
 0x31e   :  { %v1021_v5 = vpop.f32.mrf.mxu0 }
 0x31f   :  { %v1113_v63 = vmul.f32 %v2886_v3, %v2886_v3 }
 0x320   :  { %v1023_v6 = vpop.f32.mrf.mxu0 }
 0x321   :  { %v2890_v9 = vsub.f32 %v1021_v5, %v1023_v6  ;;  %1826 = vmatmul.mubr.f32.gmra.mxu1 %v1113_v63 }
 0x322   :  { %v1027_v10 = vpop.f32.mrf.mxu0 }
 0x323   :  { %v1114_v12 = vmul.f32 %v2890_v9, %v2890_v9 }
 0x324   :  { %v1029_v13 = vpop.f32.mrf.mxu0 }
 0x325   :  { %v2894_v15 = vsub.f32 %v1027_v10, %v1029_v13  ;;  %1828 = vmatprep.mubr.f32.mxu1 %v1114_v12 }
 0x326   :  { %v1033_v7 = vpop.f32.mrf.mxu0 }
 0x327   :  { %v1115_v30 = vmul.f32 %v2894_v15, %v2894_v15 }
 0x328   :  { %v1035_v31 = vpop.f32.mrf.mxu0 }
 0x329   :  { %v2898_v32 = vsub.f32 %v1033_v7, %v1035_v31  ;;  %1829 = vmatmul.mubr.f32.gmra.mxu1 %v1115_v30 }
 0x32a   :  { %v1039_v34 = vpop.f32.mrf.mxu0 }
 0x32b   :  { %v1116_v35 = vmul.f32 %v2898_v32, %v2898_v32 }
 0x32c   :  { %v1041_v37 = vpop.f32.mrf.mxu0 }
 0x32d   :  { %v2902_v39 = vsub.f32 %v1039_v34, %v1041_v37  ;;  %1831 = vmatprep.mubr.f32.mxu1 %v1116_v35 }
 0x32e   :  { %v1045_v46 = vpop.f32.mrf.mxu0 }
 0x32f   :  { %v1117_v48 = vmul.f32 %v2902_v39, %v2902_v39 }
 0x330   :  { %v1047_v19 = vpop.f32.mrf.mxu0 }
 0x331   :  { %v2906_v20 = vsub.f32 %v1045_v46, %v1047_v19  ;;  %1832 = vmatmul.mubr.f32.gmra.mxu1 %v1117_v48 }
 0x332   :  { %v1051_v21 = vpop.f32.mrf.mxu0 }
 0x333   :  { %v1118_v24 = vmul.f32 %v2906_v20, %v2906_v20 }
 0x334   :  { %v1053_v51 = vpop.f32.mrf.mxu0 }
 0x335   :  { %v2910_v26 = vsub.f32 %v1051_v21, %v1053_v51  ;;  %1834 = vmatprep.mubr.f32.mxu1 %v1118_v24 }
 0x337   :  { %v1119_v40 = vmul.f32 %v2910_v26, %v2910_v26 }
 0x339   :  { %1835 = vmatmul.mubr.f32.gmra.mxu1 %v1119_v40 }
 0x381   :  { %v1791_v41 = vpop.f32.mrf.mxu0 }
 0x382   :  { %v1192_v42 = vadd.f32 1e-05, %v1791_v41 }
 0x383   :  { %v1186_v52 = vpop.f32.mrf.mxu0 }
 0x384   :  { %1886 = vrsqrt.f32 %v1192_v42  ;;  %v1187_v53 = vadd.f32 1e-05, %v1186_v52 }
 0x386   :  { %1888 = vrsqrt.f32 %v1187_v53 }
 0x389   :  { %v1794_v54 = vpop.f32.mrf.mxu0 }
 0x38a   :  { %v1202_v57 = vadd.f32 1e-05, %v1794_v54 }
 0x38b   :  { %v1196_v55 = vpop.f32.mrf.mxu0 }
 0x38c   :  { %1890 = vrsqrt.f32 %v1202_v57  ;;  %v1197_v60 = vadd.f32 1e-05, %v1196_v55 }
 0x38e   :  { %1892 = vrsqrt.f32 %v1197_v60 }
 0x391   :  { %v1887_v62 = vpop.eup %1886  ;;  %v1797_v1 = vpop.f32.mrf.mxu1 }
 0x392   :  { %v1378_v2 = vmul.f32 %v1887_v62, %v2790_v29  ;;  %v1212_v5 = vadd.f32 1e-05, %v1797_v1 }
 0x393   :  { %v1889_v63 = vpop.eup %1888  ;;  %v1206_v6 = vpop.f32.mrf.mxu1 }
 0x394   :  { %v1414_v10 = vmul.f32 %v2610_v27, %v1378_v2  ;;  %v1377_v12 = vmul.f32 %v1889_v63, %v2786_v14  ;;  %1894 = vrsqrt.f32 %v1212_v5  ;;  %v1207_v13 = vadd.f32 1e-05, %v1206_v6 }
 0x396   :  { %v1450_v7 = vadd.f32 %v2613_v50, %v1414_v10  ;;  %v1413_v30 = vmul.f32 %v2610_v27, %v1377_v12  ;;  %1896 = vrsqrt.f32 %v1207_v13 }
 0x398   :  { %v1482_v31 = vmax.f32 %v1450_v7, 0.0  ;;  %v1449_v34 = vadd.f32 %v2613_v50, %v1413_v30 }
 0x399   :  { %v1891_v35 = vpop.eup %1890  ;;  %v1800_v37 = vpop.f32.mrf.mxu1 }
 0x39a   :  { %1514 = vst [vmem:[%s3113_s6 + $0x8] sm:$0xff] %v1482_v31  ;;  %v1481_v29 = vmax.f32 %v1449_v34, 0.0  ;;  %v1380_v46 = vmul.f32 %v1891_v35, %v2798_v36  ;;  %v1222_v14 = vadd.f32 1e-05, %v1800_v37 }
 0x39b   :  { %v1893_v48 = vpop.eup %1892  ;;  %v1216_v19 = vpop.f32.mrf.mxu1 }
 0x39c   :  { %1513 = vst [vmem:[%s3113_s6] sm:$0xff] %v1481_v29  ;;  %v1416_v21 = vmul.f32 %v2610_v27, %v1380_v46  ;;  %v1379_v24 = vmul.f32 %v1893_v48, %v2794_v33  ;;  %1898 = vrsqrt.f32 %v1222_v14  ;;  %v1217_v51 = vadd.f32 1e-05, %v1216_v19 }
 0x39e   :  { %v1452_v40 = vadd.f32 %v2613_v50, %v1416_v21  ;;  %v1415_v41 = vmul.f32 %v2610_v27, %v1379_v24  ;;  %1900 = vrsqrt.f32 %v1217_v51 }
 0x3a0   :  { %v1484_v42 = vmax.f32 %v1452_v40, 0.0  ;;  %v1451_v36 = vadd.f32 %v2613_v50, %v1415_v41 }
 0x3a1   :  { %v1895_v52 = vpop.eup %1894  ;;  %v1803_v53 = vpop.f32.mrf.mxu1 }
 0x3a2   :  { %1516 = vst [vmem:[%s3113_s6 + $0x18] sm:$0xff] %v1484_v42  ;;  %v1483_v54 = vmax.f32 %v1451_v36, 0.0  ;;  %v1382_v57 = vmul.f32 %v1895_v52, %v2806_v18  ;;  %v1232_v33 = vadd.f32 1e-05, %v1803_v53 }
 0x3a3   :  { %v1897_v55 = vpop.eup %1896  ;;  %v1226_v60 = vpop.f32.mrf.mxu1 }
 0x3a4   :  { %1515 = vst [vmem:[%s3113_s6 + $0x10] sm:$0xff] %v1483_v54  ;;  %v1418_v62 = vmul.f32 %v2610_v27, %v1382_v57  ;;  %v1381_v1 = vmul.f32 %v1897_v55, %v2802_v45  ;;  %1902 = vrsqrt.f32 %v1232_v33  ;;  %v1227_v2 = vadd.f32 1e-05, %v1226_v60 }
 0x3a6   :  { %v1454_v5 = vadd.f32 %v2613_v50, %v1418_v62  ;;  %v1417_v63 = vmul.f32 %v2610_v27, %v1381_v1  ;;  %1904 = vrsqrt.f32 %v1227_v2 }
 0x3a8   :  { %v1486_v6 = vmax.f32 %v1454_v5, 0.0  ;;  %v1453_v18 = vadd.f32 %v2613_v50, %v1417_v63 }
 0x3a9   :  { %v1899_v10 = vpop.eup %1898  ;;  %v1806_v12 = vpop.f32.mrf.mxu1 }
 0x3aa   :  { %1518 = vst [vmem:[%s3113_s6 + $0x28] sm:$0xff] %v1486_v6  ;;  %v1485_v13 = vmax.f32 %v1453_v18, 0.0  ;;  %v1384_v7 = vmul.f32 %v1899_v10, %v2814_v25  ;;  %v1242_v45 = vadd.f32 1e-05, %v1806_v12 }
 0x3ab   :  { %v1901_v30 = vpop.eup %1900  ;;  %v1236_v31 = vpop.f32.mrf.mxu1 }
 0x3ac   :  { %1517 = vst [vmem:[%s3113_s6 + $0x20] sm:$0xff] %v1485_v13  ;;  %v1420_v34 = vmul.f32 %v2610_v27, %v1384_v7  ;;  %v1383_v35 = vmul.f32 %v1901_v30, %v2810_v22  ;;  %1906 = vrsqrt.f32 %v1242_v45  ;;  %v1237_v37 = vadd.f32 1e-05, %v1236_v31 }
 0x3ae   :  { %v1456_v29 = vadd.f32 %v2613_v50, %v1420_v34  ;;  %v1419_v46 = vmul.f32 %v2610_v27, %v1383_v35  ;;  %1908 = vrsqrt.f32 %v1237_v37 }
 0x3b0   :  { %v1488_v14 = vmax.f32 %v1456_v29, 0.0  ;;  %v1455_v25 = vadd.f32 %v2613_v50, %v1419_v46 }
 0x3b1   :  { %v1903_v48 = vpop.eup %1902  ;;  %v1809_v19 = vpop.f32.mrf.mxu1 }
 0x3b2   :  { %1520 = vst [vmem:[%s3113_s6 + $0x38] sm:$0xff] %v1488_v14  ;;  %v1487_v21 = vmax.f32 %v1455_v25, 0.0  ;;  %v1386_v24 = vmul.f32 %v1903_v48, %v2822_v44  ;;  %v1252_v22 = vadd.f32 1e-05, %v1809_v19 }
 0x3b3   :  { %v1905_v51 = vpop.eup %1904  ;;  %v1246_v40 = vpop.f32.mrf.mxu1 }
 0x3b4   :  { %1519 = vst [vmem:[%s3113_s6 + $0x30] sm:$0xff] %v1487_v21  ;;  %v1422_v41 = vmul.f32 %v2610_v27, %v1386_v24  ;;  %v1385_v42 = vmul.f32 %v1905_v51, %v2818_v47  ;;  %1910 = vrsqrt.f32 %v1252_v22  ;;  %v1247_v36 = vadd.f32 1e-05, %v1246_v40 }
 0x3b6   :  { %v1458_v52 = vadd.f32 %v2613_v50, %v1422_v41  ;;  %v1421_v53 = vmul.f32 %v2610_v27, %v1385_v42  ;;  %1912 = vrsqrt.f32 %v1247_v36 }
 0x3b8   :  { %v1490_v54 = vmax.f32 %v1458_v52, 0.0  ;;  %v1457_v44 = vadd.f32 %v2613_v50, %v1421_v53 }
 0x3b9   :  { %v1907_v57 = vpop.eup %1906  ;;  %v1812_v33 = vpop.f32.mrf.mxu1 }
 0x3ba   :  { %1522 = vst [vmem:[%s3113_s6 + $0x48] sm:$0xff] %v1490_v54  ;;  %v1489_v55 = vmax.f32 %v1457_v44, 0.0  ;;  %v1388_v60 = vmul.f32 %v1907_v57, %v2830_v58  ;;  %v1262_v47 = vadd.f32 1e-05, %v1812_v33 }
 0x3bb   :  { %v1909_v62 = vpop.eup %1908  ;;  %v1256_v1 = vpop.f32.mrf.mxu1 }
 0x3bc   :  { %1521 = vst [vmem:[%s3113_s6 + $0x40] sm:$0xff] %v1489_v55  ;;  %v1424_v2 = vmul.f32 %v2610_v27, %v1388_v60  ;;  %v1387_v5 = vmul.f32 %v1909_v62, %v2826_v59  ;;  %1914 = vrsqrt.f32 %v1262_v47  ;;  %v1257_v63 = vadd.f32 1e-05, %v1256_v1 }
 0x3be   :  { %v1460_v6 = vadd.f32 %v2613_v50, %v1424_v2  ;;  %v1423_v18 = vmul.f32 %v2610_v27, %v1387_v5  ;;  %1916 = vrsqrt.f32 %v1257_v63 }
 0x3c0   :  { %v1492_v10 = vmax.f32 %v1460_v6, 0.0  ;;  %v1459_v58 = vadd.f32 %v2613_v50, %v1423_v18 }
 0x3c1   :  { %v1911_v12 = vpop.eup %1910  ;;  %v1815_v13 = vpop.f32.mrf.mxu1 }
 0x3c2   :  { %1524 = vst [vmem:[%s3113_s6 + $0x58] sm:$0xff] %v1492_v10  ;;  %v1491_v7 = vmax.f32 %v1459_v58, 0.0  ;;  %v1390_v45 = vmul.f32 %v1911_v12, %v2838_v4  ;;  %v1272_v59 = vadd.f32 1e-05, %v1815_v13 }
 0x3c3   :  { %v1913_v30 = vpop.eup %1912  ;;  %v1266_v31 = vpop.f32.mrf.mxu1 }
 0x3c4   :  { %1523 = vst [vmem:[%s3113_s6 + $0x50] sm:$0xff] %v1491_v7  ;;  %v1426_v34 = vmul.f32 %v2610_v27, %v1390_v45  ;;  %v1389_v35 = vmul.f32 %v1913_v30, %v2834_v0  ;;  %1918 = vrsqrt.f32 %v1272_v59  ;;  %v1267_v37 = vadd.f32 1e-05, %v1266_v31 }
 0x3c6   :  { %v1462_v29 = vadd.f32 %v2613_v50, %v1426_v34  ;;  %v1425_v46 = vmul.f32 %v2610_v27, %v1389_v35  ;;  %1920 = vrsqrt.f32 %v1267_v37 }
 0x3c8   :  { %v1494_v14 = vmax.f32 %v1462_v29, 0.0  ;;  %v1461_v4 = vadd.f32 %v2613_v50, %v1425_v46 }
 0x3c9   :  { %v1915_v25 = vpop.eup %1914  ;;  %v1818_v48 = vpop.f32.mrf.mxu1 }
 0x3ca   :  { %1526 = vst [vmem:[%s3113_s6 + $0x68] sm:$0xff] %v1494_v14  ;;  %v1493_v19 = vmax.f32 %v1461_v4, 0.0  ;;  %v1392_v21 = vmul.f32 %v1915_v25, %v2846_v11  ;;  %v1282_v0 = vadd.f32 1e-05, %v1818_v48 }
 0x3cb   :  { %v1917_v24 = vpop.eup %1916  ;;  %v1276_v22 = vpop.f32.mrf.mxu1 }
 0x3cc   :  { %1525 = vst [vmem:[%s3113_s6 + $0x60] sm:$0xff] %v1493_v19  ;;  %v1428_v51 = vmul.f32 %v2610_v27, %v1392_v21  ;;  %v1391_v40 = vmul.f32 %v1917_v24, %v2842_v8  ;;  %1922 = vrsqrt.f32 %v1282_v0  ;;  %v1277_v41 = vadd.f32 1e-05, %v1276_v22 }
 0x3ce   :  { %v1464_v42 = vadd.f32 %v2613_v50, %v1428_v51  ;;  %v1427_v36 = vmul.f32 %v2610_v27, %v1391_v40  ;;  %1924 = vrsqrt.f32 %v1277_v41 }
 0x3d0   :  { %v1496_v52 = vmax.f32 %v1464_v42, 0.0  ;;  %v1463_v11 = vadd.f32 %v2613_v50, %v1427_v36 }
 0x3d1   :  { %v1919_v53 = vpop.eup %1918  ;;  %v1821_v54 = vpop.f32.mrf.mxu1 }
 0x3d2   :  { %1528 = vst [vmem:[%s3113_s6 + $0x78] sm:$0xff] %v1496_v52  ;;  %v1495_v44 = vmax.f32 %v1463_v11, 0.0  ;;  %v1394_v57 = vmul.f32 %v1919_v53, %v2854_v16  ;;  %v1292_v8 = vadd.f32 1e-05, %v1821_v54 }
 0x3d3   :  { %v1921_v33 = vpop.eup %1920  ;;  %v1286_v55 = vpop.f32.mrf.mxu1 }
 0x3d4   :  { %1527 = vst [vmem:[%s3113_s6 + $0x70] sm:$0xff] %v1495_v44  ;;  %v1430_v60 = vmul.f32 %v2610_v27, %v1394_v57  ;;  %v1393_v47 = vmul.f32 %v1921_v33, %v2850_v17  ;;  %1926 = vrsqrt.f32 %v1292_v8  ;;  %v1287_v62 = vadd.f32 1e-05, %v1286_v55 }
 0x3d6   :  { %v1466_v1 = vadd.f32 %v2613_v50, %v1430_v60  ;;  %v1429_v2 = vmul.f32 %v2610_v27, %v1393_v47  ;;  %1928 = vrsqrt.f32 %v1287_v62 }
 0x3d8   :  { %v1498_v5 = vmax.f32 %v1466_v1, 0.0  ;;  %v1465_v16 = vadd.f32 %v2613_v50, %v1429_v2 }
 0x3d9   :  { %v1923_v63 = vpop.eup %1922  ;;  %v1824_v6 = vpop.f32.mrf.mxu1 }
 0x3da   :  { %1530 = vst [vmem:[%s3113_s6 + $0x88] sm:$0xff] %v1498_v5  ;;  %v1497_v18 = vmax.f32 %v1465_v16, 0.0  ;;  %v1396_v10 = vmul.f32 %v1923_v63, %v2862_v49  ;;  %v1302_v17 = vadd.f32 1e-05, %v1824_v6 }
 0x3db   :  { %v1925_v58 = vpop.eup %1924  ;;  %v1296_v12 = vpop.f32.mrf.mxu1 }
 0x3dc   :  { %1529 = vst [vmem:[%s3113_s6 + $0x80] sm:$0xff] %v1497_v18  ;;  %v1432_v13 = vmul.f32 %v2610_v27, %v1396_v10  ;;  %v1395_v7 = vmul.f32 %v1925_v58, %v2858_v38  ;;  %1930 = vrsqrt.f32 %v1302_v17  ;;  %v1297_v45 = vadd.f32 1e-05, %v1296_v12 }
 0x3de   :  { %v1468_v59 = vadd.f32 %v2613_v50, %v1432_v13  ;;  %v1431_v30 = vmul.f32 %v2610_v27, %v1395_v7  ;;  %1932 = vrsqrt.f32 %v1297_v45 }
 0x3e0   :  { %v1500_v31 = vmax.f32 %v1468_v59, 0.0  ;;  %v1467_v49 = vadd.f32 %v2613_v50, %v1431_v30 }
 0x3e1   :  { %v1927_v34 = vpop.eup %1926  ;;  %v1827_v35 = vpop.f32.mrf.mxu1 }
 0x3e2   :  { %1532 = vst [vmem:[%s3113_s6 + $0x98] sm:$0xff] %v1500_v31  ;;  %v1499_v37 = vmax.f32 %v1467_v49, 0.0  ;;  %v1398_v29 = vmul.f32 %v1927_v34, %v2870_v28  ;;  %v1312_v38 = vadd.f32 1e-05, %v1827_v35 }
 0x3e3   :  { %v1929_v46 = vpop.eup %1928  ;;  %v1306_v14 = vpop.f32.mrf.mxu1 }
 0x3e4   :  { %1531 = vst [vmem:[%s3113_s6 + $0x90] sm:$0xff] %v1499_v37  ;;  %v1434_v4 = vmul.f32 %v2610_v27, %v1398_v29  ;;  %v1397_v25 = vmul.f32 %v1929_v46, %v2866_v23  ;;  %1934 = vrsqrt.f32 %v1312_v38  ;;  %v1307_v48 = vadd.f32 1e-05, %v1306_v14 }
 0x3e6   :  { %v1470_v19 = vadd.f32 %v2613_v50, %v1434_v4  ;;  %v1433_v21 = vmul.f32 %v2610_v27, %v1397_v25  ;;  %1936 = vrsqrt.f32 %v1307_v48 }
 0x3e8   :  { %v1502_v0 = vmax.f32 %v1470_v19, 0.0  ;;  %v1469_v28 = vadd.f32 %v2613_v50, %v1433_v21 }
 0x3e9   :  { %v1931_v24 = vpop.eup %1930  ;;  %v1830_v22 = vpop.f32.mrf.mxu1 }
 0x3ea   :  { %1534 = vst [vmem:[%s3113_s6 + $0xa8] sm:$0xff] %v1502_v0  ;;  %v1501_v51 = vmax.f32 %v1469_v28, 0.0  ;;  %v1400_v40 = vmul.f32 %v1931_v24, %v2878_v56  ;;  %v1322_v23 = vadd.f32 1e-05, %v1830_v22 }
 0x3eb   :  { %v1933_v41 = vpop.eup %1932  ;;  %v1316_v42 = vpop.f32.mrf.mxu1 }
 0x3ec   :  { %1533 = vst [vmem:[%s3113_s6 + $0xa0] sm:$0xff] %v1501_v51  ;;  %v1436_v36 = vmul.f32 %v2610_v27, %v1400_v40  ;;  %v1399_v52 = vmul.f32 %v1933_v41, %v2874_v43  ;;  %1938 = vrsqrt.f32 %v1322_v23  ;;  %v1317_v11 = vadd.f32 1e-05, %v1316_v42 }
 0x3ee   :  { %v1472_v53 = vadd.f32 %v2613_v50, %v1436_v36  ;;  %v1435_v54 = vmul.f32 %v2610_v27, %v1399_v52  ;;  %1940 = vrsqrt.f32 %v1317_v11 }
 0x3f0   :  { %v1504_v44 = vmax.f32 %v1472_v53, 0.0  ;;  %v1471_v56 = vadd.f32 %v2613_v50, %v1435_v54 }
 0x3f1   :  { %v1935_v57 = vpop.eup %1934  ;;  %v1833_v8 = vpop.f32.mrf.mxu1 }
 0x3f2   :  { %1536 = vst [vmem:[%s3113_s6 + $0xb8] sm:$0xff] %v1504_v44  ;;  %v1503_v33 = vmax.f32 %v1471_v56, 0.0  ;;  %v1402_v55 = vmul.f32 %v1935_v57, %v2886_v3  ;;  %v1332_v43 = vadd.f32 1e-05, %v1833_v8 }
 0x3f3   :  { %v1937_v60 = vpop.eup %1936  ;;  %v1326_v47 = vpop.f32.mrf.mxu1 }
 0x3f4   :  { %1535 = vst [vmem:[%s3113_s6 + $0xb0] sm:$0xff] %v1503_v33  ;;  %v1438_v62 = vmul.f32 %v2610_v27, %v1402_v55  ;;  %v1401_v1 = vmul.f32 %v1937_v60, %v2882_v61  ;;  %1942 = vrsqrt.f32 %v1332_v43  ;;  %v1327_v2 = vadd.f32 1e-05, %v1326_v47 }
 0x3f6   :  { %v1474_v5 = vadd.f32 %v2613_v50, %v1438_v62  ;;  %v1437_v16 = vmul.f32 %v2610_v27, %v1401_v1  ;;  %1944 = vrsqrt.f32 %v1327_v2 }
 0x3f8   :  { %v1506_v63 = vmax.f32 %v1474_v5, 0.0  ;;  %v1473_v3 = vadd.f32 %v2613_v50, %v1437_v16 }
 0x3f9   :  { %v1939_v6 = vpop.eup %1938  ;;  %v1836_v18 = vpop.f32.mrf.mxu1 }
 0x3fa   :  { %1538 = vst [vmem:[%s3113_s6 + $0xc8] sm:$0xff] %v1506_v63  ;;  %v1505_v10 = vmax.f32 %v1473_v3, 0.0  ;;  %v1404_v17 = vmul.f32 %v1939_v6, %v2894_v15  ;;  %v1342_v61 = vadd.f32 1e-05, %v1836_v18 }
 0x3fb   :  { %v1941_v58 = vpop.eup %1940  ;;  %v1336_v12 = vpop.f32.mrf.mxu1 }
 0x3fc   :  { %1537 = vst [vmem:[%s3113_s6 + $0xc0] sm:$0xff] %v1505_v10  ;;  %v1440_v13 = vmul.f32 %v2610_v27, %v1404_v17  ;;  %v1403_v7 = vmul.f32 %v1941_v58, %v2890_v9  ;;  %1946 = vrsqrt.f32 %v1342_v61  ;;  %v1337_v45 = vadd.f32 1e-05, %v1336_v12 }
 0x3fe   :  { %v1476_v59 = vadd.f32 %v2613_v50, %v1440_v13  ;;  %v1439_v30 = vmul.f32 %v2610_v27, %v1403_v7  ;;  %1948 = vrsqrt.f32 %v1337_v45 }
 0x400   :  { %v1508_v31 = vmax.f32 %v1476_v59, 0.0  ;;  %v1475_v15 = vadd.f32 %v2613_v50, %v1439_v30 }
 0x401   :  { %v1943_v49 = vpop.eup %1942 }
 0x402   :  { %1540 = vst [vmem:[%s3113_s6 + $0xd8] sm:$0xff] %v1508_v31  ;;  %v1507_v34 = vmax.f32 %v1475_v15, 0.0  ;;  %v1406_v35 = vmul.f32 %v1943_v49, %v2902_v39 }
 0x403   :  { %v1945_v37 = vpop.eup %1944 }
 0x404   :  { %1539 = vst [vmem:[%s3113_s6 + $0xd0] sm:$0xff] %v1507_v34  ;;  %v1442_v9 = vmul.f32 %v2610_v27, %v1406_v35  ;;  %v1405_v29 = vmul.f32 %v1945_v37, %v2898_v32 }
 0x406   :  { %v1478_v38 = vadd.f32 %v2613_v50, %v1442_v9  ;;  %v1441_v46 = vmul.f32 %v2610_v27, %v1405_v29 }
 0x408   :  { %v1510_v14 = vmax.f32 %v1478_v38, 0.0  ;;  %v1477_v4 = vadd.f32 %v2613_v50, %v1441_v46 }
 0x409   :  { %v1947_v25 = vpop.eup %1946 }
 0x40a   :  { %1542 = vst [vmem:[%s3113_s6 + $0xe8] sm:$0xff] %v1510_v14  ;;  %v1509_v39 = vmax.f32 %v1477_v4, 0.0  ;;  %v1408_v48 = vmul.f32 %v1947_v25, %v2910_v26 }
 0x40b   :  { %v1949_v19 = vpop.eup %1948 }
 0x40c   :  { %1541 = vst [vmem:[%s3113_s6 + $0xe0] sm:$0xff] %v1509_v39  ;;  %v1444_v32 = vmul.f32 %v2610_v27, %v1408_v48  ;;  %v1407_v21 = vmul.f32 %v1949_v19, %v2906_v20 }
 0x40e   :  { %v1480_v0 = vadd.f32 %v2613_v50, %v1444_v32  ;;  %v1443_v28 = vmul.f32 %v2610_v27, %v1407_v21 }
 0x410   :  { %v1512_v24 = vmax.f32 %v1480_v0, 0.0  ;;  %v1479_v22 = vadd.f32 %v2613_v50, %v1443_v28 }
 0x412   :  { %1544 = vst [vmem:[%s3113_s6 + $0xf8] sm:$0xff] %v1512_v24  ;;  %v1511_v26 = vmax.f32 %v1479_v22, 0.0 }
 0x414   :  { %1543 = vst [vmem:[%s3113_s6 + $0xf0] sm:$0xff] %v1511_v26 }

</bundles_post_ra>
